<compile_context>
chip_gen: v7x
topology: tpu7x:2x2x1
jax: 0.10.0
libtpu: 0.0.40
codegen_flags: <defaults>
</compile_context>

<pallas_src>
import functools

import jax
import jax.numpy as jnp
from jax import lax
from jax.experimental import pallas as pl
from jax.experimental.pallas import tpu as pltpu


def make_lstm_kernel(num_layers, T, B, H, C):
    """Build a Pallas kernel for a num_layers-deep LSTM + Linear head.

    Ref order:
      pre_gates0 (T*B, 4H)              # layer-0 input projection (wrapper)
      w_hh_0^T   (H, 4H)
      for l in 1..L-1: w_ih_l^T (H,4H), w_hh_l^T (H,4H), bias_l (1,4H)
      fc_w^T (H, C), fc_b (1, C)
      out (L*B, C)
      scratch: seq_buf (T*B, H), pg_buf (T*B, 4H), h_all (L*B, H)
    Rows of the (T*B, ...) buffers are time-major: row t*B + b <-> (t, b).
    """
    L = num_layers

    def kernel(*refs):
        pg0_ref = refs[0]
        w_hh0_ref = refs[1]
        layer_refs = refs[2:2 + 3 * (L - 1)]
        fc_w_ref = refs[2 + 3 * (L - 1)]      # (H, C)
        fc_b_ref = refs[3 + 3 * (L - 1)]      # (1, C)
        out_ref = refs[4 + 3 * (L - 1)]       # (L*B, C)
        seq_buf = refs[5 + 3 * (L - 1)]       # (T*B, H)  previous layer outputs
        pg_buf = refs[6 + 3 * (L - 1)]        # (T*B, 4H) hoisted pre-gates
        h_all = refs[7 + 3 * (L - 1)]         # (L*B, H)  final hidden states

        for l in range(L):
            if l == 0:
                w_hh = w_hh0_ref[...]
                pg_ref = pg0_ref
            else:
                w_ih = layer_refs[3 * (l - 1)][...]       # (H, 4H)
                w_hh = layer_refs[3 * (l - 1) + 1][...]   # (H, 4H)
                bias = layer_refs[3 * (l - 1) + 2][...]   # (1, 4H)
                # Hoisted full-sequence input projection: one MXU GEMM with
                # M = T*B instead of T tiny M = B matmuls on the serial path.
                pg_buf[...] = (jnp.dot(seq_buf[...], w_ih,
                                       preferred_element_type=jnp.float32)
                               + bias)
                pg_ref = pg_buf

            write_seq = l < L - 1   # last layer's per-step output is unused

            def step(t, carry, w_hh=w_hh, pg_ref=pg_ref, write_seq=write_seq):
                h, c = carry
                r = pl.multiple_of(t * B, B)
                # Serial path: only the recurrent matmul + gate nonlinearity.
                gates = (pg_ref[pl.ds(r, B), :]
                         + jnp.dot(h, w_hh, preferred_element_type=jnp.float32))
                sig = jax.nn.sigmoid(gates)   # one EUP pass over full (B, 4H)
                tnh = jnp.tanh(gates)         # one EUP pass over full (B, 4H)
                i_g = sig[:, 0 * H:1 * H]
                f_g = sig[:, 1 * H:2 * H]
                g_g = tnh[:, 2 * H:3 * H]
                o_g = sig[:, 3 * H:4 * H]
                c_new = f_g * c + i_g * g_g
                h_new = o_g * jnp.tanh(c_new)
                if write_seq:
                    seq_buf[pl.ds(r, B), :] = h_new   # next layer's input
                return (h_new, c_new)

            h0 = jnp.zeros((B, H), jnp.float32)
            c0 = jnp.zeros((B, H), jnp.float32)
            # Short fixed trip count -> fully unroll so the LLO scheduler can
            # interleave h@W_hh, EUP gates, and the seq_buf store across steps.
            h_final, _ = lax.fori_loop(0, T, step, (h0, c0), unroll=True)
            h_all[l * B:(l + 1) * B, :] = h_final

        # Single batched FC head (M = L*B) + one store, instead of L tiny ones.
        out_ref[...] = (jnp.dot(h_all[...], fc_w_ref[...],
                                preferred_element_type=jnp.float32)
                        + fc_b_ref[...]).astype(out_ref.dtype)

    return kernel


def _padded_f32_bytes_2d(shape):
    """VMEM footprint of a 2-D f32 buffer after (8, 128) tiling."""
    r, c = shape
    return ((r + 7) // 8 * 8) * ((c + 127) // 128 * 128) * 4


def lstm_forward(x, params, *, num_layers, hidden_size, num_classes):
    """x: (B, T, input_size) batch_first, like the PyTorch module."""
    B, T, I = x.shape
    H, C, L = hidden_size, num_classes, num_layers
    G = 4 * H

    xf = x.astype(jnp.float32)
    w_ih0 = params["w_ih_0"].astype(jnp.float32)                       # (4H, I)
    b0 = (params["b_ih_0"] + params["b_hh_0"]).astype(jnp.float32)     # (4H,)

    # Layer-0 input projection as one XLA GEMM over (B*T, I), then reorder to
    # time-major rows (t, b) so row t*B + b is timestep t, batch b.
    pg0 = jnp.dot(xf.reshape(B * T, I), w_ih0.T,
                  precision=lax.Precision.HIGHEST) + b0                # (B*T, 4H)
    pg0 = pg0.reshape(B, T, G).transpose(1, 0, 2).reshape(T * B, G)    # (T*B, 4H)

    inputs = [pg0, params["w_hh_0"].T.astype(jnp.float32)]             # (H, 4H)
    for l in range(1, L):
        inputs.append(params[f"w_ih_{l}"].T.astype(jnp.float32))       # (H, 4H)
        inputs.append(params[f"w_hh_{l}"].T.astype(jnp.float32))       # (H, 4H)
        inputs.append((params[f"b_ih_{l}"] + params[f"b_hh_{l}"])
                      .astype(jnp.float32)[None, :])                   # (1, 4H)
    inputs.append(params["fc_w"].T.astype(jnp.float32))                # (H, C)
    inputs.append(params["fc_b"].astype(jnp.float32)[None, :])         # (1, C)

    # Explicit VMEM budget: all resident buffers (padded to (8,128) tiles),
    # 2x headroom, floored at 32 MiB (valid on v5e/v6e/v7x).
    buf_shapes = ([tuple(a.shape) for a in inputs]
                  + [(L * B, C), (T * B, H), (T * B, G), (L * B, H)])
    vmem_need = sum(_padded_f32_bytes_2d(s) for s in buf_shapes)
    vmem_limit = max(2 * vmem_need + (1 << 20), 32 * 1024 * 1024)

    vmem = pl.BlockSpec(memory_space=pltpu.MemorySpace.VMEM)
    out = pl.pallas_call(
        make_lstm_kernel(L, T, B, H, C),
        out_shape=jax.ShapeDtypeStruct((L * B, C), jnp.float32),
        in_specs=[vmem] * len(inputs),
        out_specs=vmem,
        scratch_shapes=[pltpu.VMEM((T * B, H), jnp.float32),   # seq_buf
                        pltpu.VMEM((T * B, G), jnp.float32),   # pre-gates
                        pltpu.VMEM((L * B, H), jnp.float32)],  # h_all
        compiler_params=pltpu.CompilerParams(
            vmem_limit_bytes=int(vmem_limit)),
    )(*inputs)
    return out


def lstm_reference(x, params, *, num_layers, hidden_size, num_classes):
    """Pure-JAX reference matching torch.nn.LSTM(batch_first=True) + Linear."""
    B, T, _ = x.shape
    H = hidden_size
    layer_in = x.astype(jnp.float32)
    h_finals = []
    for l in range(num_layers):
        w_ih = params[f"w_ih_{l}"]
        w_hh = params[f"w_hh_{l}"]
        b = params[f"b_ih_{l}"] + params[f"b_hh_{l}"]
        h = jnp.zeros((B, H), jnp.float32)
        c = jnp.zeros((B, H), jnp.float32)
        outs = []
        for t in range(T):
            g = layer_in[:, t, :] @ w_ih.T + h @ w_hh.T + b
            i_g = jax.nn.sigmoid(g[:, 0 * H:1 * H])
            f_g = jax.nn.sigmoid(g[:, 1 * H:2 * H])
            g_g = jnp.tanh(g[:, 2 * H:3 * H])
            o_g = jax.nn.sigmoid(g[:, 3 * H:4 * H])
            c = f_g * c + i_g * g_g
            h = o_g * jnp.tanh(c)
            outs.append(h)
        layer_in = jnp.stack(outs, axis=1)
        h_finals.append(h)
    h_all = jnp.concatenate(h_finals, axis=0)  # (L*B, H)
    return h_all @ params["fc_w"].T + params["fc_b"]


def init_params(key, *, input_size, hidden_size, num_layers, num_classes):
    """Deterministic synthetic init (PyTorch-style uniform(-1/sqrt(H), 1/sqrt(H)))."""
    H = hidden_size
    bound = 1.0 / jnp.sqrt(jnp.float32(H))
    params = {}
    for l in range(num_layers):
        in_l = input_size if l == 0 else H
        key, k1, k2, k3, k4 = jax.random.split(key, 5)
        params[f"w_ih_{l}"] = jax.random.uniform(k1, (4 * H, in_l), jnp.float32,
                                                 -bound, bound)
        params[f"w_hh_{l}"] = jax.random.uniform(k2, (4 * H, H), jnp.float32,
                                                 -bound, bound)
        params[f"b_ih_{l}"] = jax.random.uniform(k3, (4 * H,), jnp.float32,
                                                 -bound, bound)
        params[f"b_hh_{l}"] = jax.random.uniform(k4, (4 * H,), jnp.float32,
                                                 -bound, bound)
    key, k1, k2 = jax.random.split(key, 3)
    params["fc_w"] = jax.random.uniform(k1, (num_classes, H), jnp.float32,
                                        -bound, bound)
    params["fc_b"] = jax.random.uniform(k2, (num_classes,), jnp.float32,
                                        -bound, bound)
    return params


if __name__ == "__main__":
    # Small shapes consistent with the module: batch=2, seq=8, input=4,
    # hidden=32, layers=2, classes=3.
    B, T, I, H, L, C = 2, 8, 4, 32, 2, 3

    key = jax.random.PRNGKey(0)
    key, xk = jax.random.split(key)
    x = jax.random.normal(xk, (B, T, I), jnp.float32)
    params = init_params(key, input_size=I, hidden_size=H,
                         num_layers=L, num_classes=C)

    run = jax.jit(functools.partial(lstm_forward, num_layers=L,
                                    hidden_size=H, num_classes=C))
    out = run(x, params)
    jax.block_until_ready(out)

    ref = lstm_reference(x, params, num_layers=L, hidden_size=H, num_classes=C)
    assert out.shape == (L * B, C), out.shape
    assert jnp.allclose(out, ref, atol=1e-5, rtol=1e-5), (out, ref)

    print("KERNEL_OK")
</pallas_src>

<mosaic_0001>
module attributes {stable_mosaic.version = 11 : i64} {
  func.func @kernel(%arg0: memref<16x128xf32, #tpu.memory_space<vmem>>, %arg1: memref<32x128xf32, #tpu.memory_space<vmem>>, %arg2: memref<32x128xf32, #tpu.memory_space<vmem>>, %arg3: memref<32x128xf32, #tpu.memory_space<vmem>>, %arg4: memref<1x128xf32, #tpu.memory_space<vmem>>, %arg5: memref<32x3xf32, #tpu.memory_space<vmem>>, %arg6: memref<1x3xf32, #tpu.memory_space<vmem>>, %arg7: memref<4x3xf32, #tpu.memory_space<vmem>>, %arg8: memref<16x32xf32, #tpu.memory_space<vmem>>, %arg9: memref<16x128xf32, #tpu.memory_space<vmem>>, %arg10: memref<4x32xf32, #tpu.memory_space<vmem>>) attributes {dimension_semantics = [], scalar_prefetch = 0 : i64, scratch_operands = 3 : i64, tpu.core_type = #tpu.core_type<tc>} {
    %c0 = arith.constant 0 : index
    %c0_0 = arith.constant 0 : index
    %0 = vector.load %arg1[%c0, %c0_0] : memref<32x128xf32, #tpu.memory_space<vmem>>, vector<32x128xf32>
    %cst = arith.constant 0.000000e+00 : f32
    %1 = vector.broadcast %cst : f32 to vector<2x32xf32>
    %cst_1 = arith.constant 0.000000e+00 : f32
    %2 = vector.broadcast %cst_1 : f32 to vector<2x32xf32>
    %c0_i32 = arith.constant 0 : i32
    %c2_i32 = arith.constant 2 : i32
    %3 = arith.muli %c0_i32, %c2_i32 : i32
    %4 = tpu.assume_multiple %3, 2 : i32
    %5 = arith.index_cast %4 : i32 to index
    %c0_2 = arith.constant 0 : index
    %6 = vector.load %arg0[%5, %c0_2] : memref<16x128xf32, #tpu.memory_space<vmem>>, vector<2x128xf32>
    %cst_3 = arith.constant dense<0.000000e+00> : vector<2x128xf32>
    %7 = tpu.matmul %1, %0, %cst_3 {dimension_numbers = #tpu.dot_dimension_numbers<[1], [0], [0], [1], [0, 0, 1, 1], [], []>} : vector<2x32xf32>, vector<32x128xf32>, vector<2x128xf32> -> vector<2x128xf32>
    %8 = arith.addf %6, %7 : vector<2x128xf32>
    %9 = arith.negf %8 : vector<2x128xf32>
    %10 = math.exp %9 : vector<2x128xf32>
    %cst_4 = arith.constant 1.000000e+00 : f32
    %11 = vector.broadcast %cst_4 : f32 to vector<2x128xf32>
    %12 = arith.addf %11, %10 : vector<2x128xf32>
    %13 = arith.divf %11, %12 : vector<2x128xf32>
    %14 = math.tanh %8 : vector<2x128xf32>
    %15 = vector.extract_strided_slice %13 {offsets = [0, 0], sizes = [2, 32], strides = [1, 1]} : vector<2x128xf32> to vector<2x32xf32>
    %16 = vector.extract_strided_slice %13 {offsets = [0, 32], sizes = [2, 32], strides = [1, 1]} : vector<2x128xf32> to vector<2x32xf32>
    %17 = vector.extract_strided_slice %14 {offsets = [0, 64], sizes = [2, 32], strides = [1, 1]} : vector<2x128xf32> to vector<2x32xf32>
    %18 = vector.extract_strided_slice %13 {offsets = [0, 96], sizes = [2, 32], strides = [1, 1]} : vector<2x128xf32> to vector<2x32xf32>
    %19 = arith.mulf %16, %2 : vector<2x32xf32>
    %20 = arith.mulf %15, %17 : vector<2x32xf32>
    %21 = arith.addf %19, %20 : vector<2x32xf32>
    %22 = math.tanh %21 : vector<2x32xf32>
    %23 = arith.mulf %18, %22 : vector<2x32xf32>
    %24 = arith.index_cast %4 : i32 to index
    %c0_5 = arith.constant 0 : index
    %25 = vector.load %arg8[%24, %c0_5] : memref<16x32xf32, #tpu.memory_space<vmem>>, vector<2x32xf32>
    tpu.vector_store %arg8[%24, %c0_5], %23 {strides = array<i32>} : memref<16x32xf32, #tpu.memory_space<vmem>>, vector<2x32xf32>,
    %c1_i32 = arith.constant 1 : i32
    %c2_i32_6 = arith.constant 2 : i32
    %26 = arith.muli %c1_i32, %c2_i32_6 : i32
    %27 = tpu.assume_multiple %26, 2 : i32
    %28 = arith.index_cast %27 : i32 to index
    %c0_7 = arith.constant 0 : index
    %29 = vector.load %arg0[%28, %c0_7] : memref<16x128xf32, #tpu.memory_space<vmem>>, vector<2x128xf32>
    %cst_8 = arith.constant dense<0.000000e+00> : vector<2x128xf32>
    %30 = tpu.matmul %23, %0, %cst_8 {dimension_numbers = #tpu.dot_dimension_numbers<[1], [0], [0], [1], [0, 0, 1, 1], [], []>} : vector<2x32xf32>, vector<32x128xf32>, vector<2x128xf32> -> vector<2x128xf32>
    %31 = arith.addf %29, %30 : vector<2x128xf32>
    %32 = arith.negf %31 : vector<2x128xf32>
    %33 = math.exp %32 : vector<2x128xf32>
    %cst_9 = arith.constant 1.000000e+00 : f32
    %34 = vector.broadcast %cst_9 : f32 to vector<2x128xf32>
    %35 = arith.addf %34, %33 : vector<2x128xf32>
    %36 = arith.divf %34, %35 : vector<2x128xf32>
    %37 = math.tanh %31 : vector<2x128xf32>
    %38 = vector.extract_strided_slice %36 {offsets = [0, 0], sizes = [2, 32], strides = [1, 1]} : vector<2x128xf32> to vector<2x32xf32>
    %39 = vector.extract_strided_slice %36 {offsets = [0, 32], sizes = [2, 32], strides = [1, 1]} : vector<2x128xf32> to vector<2x32xf32>
    %40 = vector.extract_strided_slice %37 {offsets = [0, 64], sizes = [2, 32], strides = [1, 1]} : vector<2x128xf32> to vector<2x32xf32>
    %41 = vector.extract_strided_slice %36 {offsets = [0, 96], sizes = [2, 32], strides = [1, 1]} : vector<2x128xf32> to vector<2x32xf32>
    %42 = arith.mulf %39, %21 : vector<2x32xf32>
    %43 = arith.mulf %38, %40 : vector<2x32xf32>
    %44 = arith.addf %42, %43 : vector<2x32xf32>
    %45 = math.tanh %44 : vector<2x32xf32>
    %46 = arith.mulf %41, %45 : vector<2x32xf32>
    %47 = arith.index_cast %27 : i32 to index
    %c0_10 = arith.constant 0 : index
    %48 = vector.load %arg8[%47, %c0_10] : memref<16x32xf32, #tpu.memory_space<vmem>>, vector<2x32xf32>
    tpu.vector_store %arg8[%47, %c0_10], %46 {strides = array<i32>} : memref<16x32xf32, #tpu.memory_space<vmem>>, vector<2x32xf32>,
    %c2_i32_11 = arith.constant 2 : i32
    %c2_i32_12 = arith.constant 2 : i32
    %49 = arith.muli %c2_i32_11, %c2_i32_12 : i32
    %50 = tpu.assume_multiple %49, 2 : i32
    %51 = arith.index_cast %50 : i32 to index
    %c0_13 = arith.constant 0 : index
    %52 = vector.load %arg0[%51, %c0_13] : memref<16x128xf32, #tpu.memory_space<vmem>>, vector<2x128xf32>
    %cst_14 = arith.constant dense<0.000000e+00> : vector<2x128xf32>
    %53 = tpu.matmul %46, %0, %cst_14 {dimension_numbers = #tpu.dot_dimension_numbers<[1], [0], [0], [1], [0, 0, 1, 1], [], []>} : vector<2x32xf32>, vector<32x128xf32>, vector<2x128xf32> -> vector<2x128xf32>
    %54 = arith.addf %52, %53 : vector<2x128xf32>
    %55 = arith.negf %54 : vector<2x128xf32>
    %56 = math.exp %55 : vector<2x128xf32>
    %cst_15 = arith.constant 1.000000e+00 : f32
    %57 = vector.broadcast %cst_15 : f32 to vector<2x128xf32>
    %58 = arith.addf %57, %56 : vector<2x128xf32>
    %59 = arith.divf %57, %58 : vector<2x128xf32>
    %60 = math.tanh %54 : vector<2x128xf32>
    %61 = vector.extract_strided_slice %59 {offsets = [0, 0], sizes = [2, 32], strides = [1, 1]} : vector<2x128xf32> to vector<2x32xf32>
    %62 = vector.extract_strided_slice %59 {offsets = [0, 32], sizes = [2, 32], strides = [1, 1]} : vector<2x128xf32> to vector<2x32xf32>
    %63 = vector.extract_strided_slice %60 {offsets = [0, 64], sizes = [2, 32], strides = [1, 1]} : vector<2x128xf32> to vector<2x32xf32>
    %64 = vector.extract_strided_slice %59 {offsets = [0, 96], sizes = [2, 32], strides = [1, 1]} : vector<2x128xf32> to vector<2x32xf32>
    %65 = arith.mulf %62, %44 : vector<2x32xf32>
    %66 = arith.mulf %61, %63 : vector<2x32xf32>
    %67 = arith.addf %65, %66 : vector<2x32xf32>
    %68 = math.tanh %67 : vector<2x32xf32>
    %69 = arith.mulf %64, %68 : vector<2x32xf32>
    %70 = arith.index_cast %50 : i32 to index
    %c0_16 = arith.constant 0 : index
    %71 = vector.load %arg8[%70, %c0_16] : memref<16x32xf32, #tpu.memory_space<vmem>>, vector<2x32xf32>
    tpu.vector_store %arg8[%70, %c0_16], %69 {strides = array<i32>} : memref<16x32xf32, #tpu.memory_space<vmem>>, vector<2x32xf32>,
    %c3_i32 = arith.constant 3 : i32
    %c2_i32_17 = arith.constant 2 : i32
    %72 = arith.muli %c3_i32, %c2_i32_17 : i32
    %73 = tpu.assume_multiple %72, 2 : i32
    %74 = arith.index_cast %73 : i32 to index
    %c0_18 = arith.constant 0 : index
    %75 = vector.load %arg0[%74, %c0_18] : memref<16x128xf32, #tpu.memory_space<vmem>>, vector<2x128xf32>
    %cst_19 = arith.constant dense<0.000000e+00> : vector<2x128xf32>
    %76 = tpu.matmul %69, %0, %cst_19 {dimension_numbers = #tpu.dot_dimension_numbers<[1], [0], [0], [1], [0, 0, 1, 1], [], []>} : vector<2x32xf32>, vector<32x128xf32>, vector<2x128xf32> -> vector<2x128xf32>
    %77 = arith.addf %75, %76 : vector<2x128xf32>
    %78 = arith.negf %77 : vector<2x128xf32>
    %79 = math.exp %78 : vector<2x128xf32>
    %cst_20 = arith.constant 1.000000e+00 : f32
    %80 = vector.broadcast %cst_20 : f32 to vector<2x128xf32>
    %81 = arith.addf %80, %79 : vector<2x128xf32>
    %82 = arith.divf %80, %81 : vector<2x128xf32>
    %83 = math.tanh %77 : vector<2x128xf32>
    %84 = vector.extract_strided_slice %82 {offsets = [0, 0], sizes = [2, 32], strides = [1, 1]} : vector<2x128xf32> to vector<2x32xf32>
    %85 = vector.extract_strided_slice %82 {offsets = [0, 32], sizes = [2, 32], strides = [1, 1]} : vector<2x128xf32> to vector<2x32xf32>
    %86 = vector.extract_strided_slice %83 {offsets = [0, 64], sizes = [2, 32], strides = [1, 1]} : vector<2x128xf32> to vector<2x32xf32>
    %87 = vector.extract_strided_slice %82 {offsets = [0, 96], sizes = [2, 32], strides = [1, 1]} : vector<2x128xf32> to vector<2x32xf32>
    %88 = arith.mulf %85, %67 : vector<2x32xf32>
    %89 = arith.mulf %84, %86 : vector<2x32xf32>
    %90 = arith.addf %88, %89 : vector<2x32xf32>
    %91 = math.tanh %90 : vector<2x32xf32>
    %92 = arith.mulf %87, %91 : vector<2x32xf32>
    %93 = arith.index_cast %73 : i32 to index
    %c0_21 = arith.constant 0 : index
    %94 = vector.load %arg8[%93, %c0_21] : memref<16x32xf32, #tpu.memory_space<vmem>>, vector<2x32xf32>
    tpu.vector_store %arg8[%93, %c0_21], %92 {strides = array<i32>} : memref<16x32xf32, #tpu.memory_space<vmem>>, vector<2x32xf32>,
    %c4_i32 = arith.constant 4 : i32
    %c2_i32_22 = arith.constant 2 : i32
    %95 = arith.muli %c4_i32, %c2_i32_22 : i32
    %96 = tpu.assume_multiple %95, 2 : i32
    %97 = arith.index_cast %96 : i32 to index
    %c0_23 = arith.constant 0 : index
    %98 = vector.load %arg0[%97, %c0_23] : memref<16x128xf32, #tpu.memory_space<vmem>>, vector<2x128xf32>
    %cst_24 = arith.constant dense<0.000000e+00> : vector<2x128xf32>
    %99 = tpu.matmul %92, %0, %cst_24 {dimension_numbers = #tpu.dot_dimension_numbers<[1], [0], [0], [1], [0, 0, 1, 1], [], []>} : vector<2x32xf32>, vector<32x128xf32>, vector<2x128xf32> -> vector<2x128xf32>
    %100 = arith.addf %98, %99 : vector<2x128xf32>
    %101 = arith.negf %100 : vector<2x128xf32>
    %102 = math.exp %101 : vector<2x128xf32>
    %cst_25 = arith.constant 1.000000e+00 : f32
    %103 = vector.broadcast %cst_25 : f32 to vector<2x128xf32>
    %104 = arith.addf %103, %102 : vector<2x128xf32>
    %105 = arith.divf %103, %104 : vector<2x128xf32>
    %106 = math.tanh %100 : vector<2x128xf32>
    %107 = vector.extract_strided_slice %105 {offsets = [0, 0], sizes = [2, 32], strides = [1, 1]} : vector<2x128xf32> to vector<2x32xf32>
    %108 = vector.extract_strided_slice %105 {offsets = [0, 32], sizes = [2, 32], strides = [1, 1]} : vector<2x128xf32> to vector<2x32xf32>
    %109 = vector.extract_strided_slice %106 {offsets = [0, 64], sizes = [2, 32], strides = [1, 1]} : vector<2x128xf32> to vector<2x32xf32>
    %110 = vector.extract_strided_slice %105 {offsets = [0, 96], sizes = [2, 32], strides = [1, 1]} : vector<2x128xf32> to vector<2x32xf32>
    %111 = arith.mulf %108, %90 : vector<2x32xf32>
    %112 = arith.mulf %107, %109 : vector<2x32xf32>
    %113 = arith.addf %111, %112 : vector<2x32xf32>
    %114 = math.tanh %113 : vector<2x32xf32>
    %115 = arith.mulf %110, %114 : vector<2x32xf32>
    %116 = arith.index_cast %96 : i32 to index
    %c0_26 = arith.constant 0 : index
    %117 = vector.load %arg8[%116, %c0_26] : memref<16x32xf32, #tpu.memory_space<vmem>>, vector<2x32xf32>
    tpu.vector_store %arg8[%116, %c0_26], %115 {strides = array<i32>} : memref<16x32xf32, #tpu.memory_space<vmem>>, vector<2x32xf32>,
    %c5_i32 = arith.constant 5 : i32
    %c2_i32_27 = arith.constant 2 : i32
    %118 = arith.muli %c5_i32, %c2_i32_27 : i32
    %119 = tpu.assume_multiple %118, 2 : i32
    %120 = arith.index_cast %119 : i32 to index
    %c0_28 = arith.constant 0 : index
    %121 = vector.load %arg0[%120, %c0_28] : memref<16x128xf32, #tpu.memory_space<vmem>>, vector<2x128xf32>
    %cst_29 = arith.constant dense<0.000000e+00> : vector<2x128xf32>
    %122 = tpu.matmul %115, %0, %cst_29 {dimension_numbers = #tpu.dot_dimension_numbers<[1], [0], [0], [1], [0, 0, 1, 1], [], []>} : vector<2x32xf32>, vector<32x128xf32>, vector<2x128xf32> -> vector<2x128xf32>
    %123 = arith.addf %121, %122 : vector<2x128xf32>
    %124 = arith.negf %123 : vector<2x128xf32>
    %125 = math.exp %124 : vector<2x128xf32>
    %cst_30 = arith.constant 1.000000e+00 : f32
    %126 = vector.broadcast %cst_30 : f32 to vector<2x128xf32>
    %127 = arith.addf %126, %125 : vector<2x128xf32>
    %128 = arith.divf %126, %127 : vector<2x128xf32>
    %129 = math.tanh %123 : vector<2x128xf32>
    %130 = vector.extract_strided_slice %128 {offsets = [0, 0], sizes = [2, 32], strides = [1, 1]} : vector<2x128xf32> to vector<2x32xf32>
    %131 = vector.extract_strided_slice %128 {offsets = [0, 32], sizes = [2, 32], strides = [1, 1]} : vector<2x128xf32> to vector<2x32xf32>
    %132 = vector.extract_strided_slice %129 {offsets = [0, 64], sizes = [2, 32], strides = [1, 1]} : vector<2x128xf32> to vector<2x32xf32>
    %133 = vector.extract_strided_slice %128 {offsets = [0, 96], sizes = [2, 32], strides = [1, 1]} : vector<2x128xf32> to vector<2x32xf32>
    %134 = arith.mulf %131, %113 : vector<2x32xf32>
    %135 = arith.mulf %130, %132 : vector<2x32xf32>
    %136 = arith.addf %134, %135 : vector<2x32xf32>
    %137 = math.tanh %136 : vector<2x32xf32>
    %138 = arith.mulf %133, %137 : vector<2x32xf32>
    %139 = arith.index_cast %119 : i32 to index
    %c0_31 = arith.constant 0 : index
    %140 = vector.load %arg8[%139, %c0_31] : memref<16x32xf32, #tpu.memory_space<vmem>>, vector<2x32xf32>
    tpu.vector_store %arg8[%139, %c0_31], %138 {strides = array<i32>} : memref<16x32xf32, #tpu.memory_space<vmem>>, vector<2x32xf32>,
    %c6_i32 = arith.constant 6 : i32
    %c2_i32_32 = arith.constant 2 : i32
    %141 = arith.muli %c6_i32, %c2_i32_32 : i32
    %142 = tpu.assume_multiple %141, 2 : i32
    %143 = arith.index_cast %142 : i32 to index
    %c0_33 = arith.constant 0 : index
    %144 = vector.load %arg0[%143, %c0_33] : memref<16x128xf32, #tpu.memory_space<vmem>>, vector<2x128xf32>
    %cst_34 = arith.constant dense<0.000000e+00> : vector<2x128xf32>
    %145 = tpu.matmul %138, %0, %cst_34 {dimension_numbers = #tpu.dot_dimension_numbers<[1], [0], [0], [1], [0, 0, 1, 1], [], []>} : vector<2x32xf32>, vector<32x128xf32>, vector<2x128xf32> -> vector<2x128xf32>
    %146 = arith.addf %144, %145 : vector<2x128xf32>
    %147 = arith.negf %146 : vector<2x128xf32>
    %148 = math.exp %147 : vector<2x128xf32>
    %cst_35 = arith.constant 1.000000e+00 : f32
    %149 = vector.broadcast %cst_35 : f32 to vector<2x128xf32>
    %150 = arith.addf %149, %148 : vector<2x128xf32>
    %151 = arith.divf %149, %150 : vector<2x128xf32>
    %152 = math.tanh %146 : vector<2x128xf32>
    %153 = vector.extract_strided_slice %151 {offsets = [0, 0], sizes = [2, 32], strides = [1, 1]} : vector<2x128xf32> to vector<2x32xf32>
    %154 = vector.extract_strided_slice %151 {offsets = [0, 32], sizes = [2, 32], strides = [1, 1]} : vector<2x128xf32> to vector<2x32xf32>
    %155 = vector.extract_strided_slice %152 {offsets = [0, 64], sizes = [2, 32], strides = [1, 1]} : vector<2x128xf32> to vector<2x32xf32>
    %156 = vector.extract_strided_slice %151 {offsets = [0, 96], sizes = [2, 32], strides = [1, 1]} : vector<2x128xf32> to vector<2x32xf32>
    %157 = arith.mulf %154, %136 : vector<2x32xf32>
    %158 = arith.mulf %153, %155 : vector<2x32xf32>
    %159 = arith.addf %157, %158 : vector<2x32xf32>
    %160 = math.tanh %159 : vector<2x32xf32>
    %161 = arith.mulf %156, %160 : vector<2x32xf32>
    %162 = arith.index_cast %142 : i32 to index
    %c0_36 = arith.constant 0 : index
    %163 = vector.load %arg8[%162, %c0_36] : memref<16x32xf32, #tpu.memory_space<vmem>>, vector<2x32xf32>
    tpu.vector_store %arg8[%162, %c0_36], %161 {strides = array<i32>} : memref<16x32xf32, #tpu.memory_space<vmem>>, vector<2x32xf32>,
    %c7_i32 = arith.constant 7 : i32
    %c2_i32_37 = arith.constant 2 : i32
    %164 = arith.muli %c7_i32, %c2_i32_37 : i32
    %165 = tpu.assume_multiple %164, 2 : i32
    %166 = arith.index_cast %165 : i32 to index
    %c0_38 = arith.constant 0 : index
    %167 = vector.load %arg0[%166, %c0_38] : memref<16x128xf32, #tpu.memory_space<vmem>>, vector<2x128xf32>
    %cst_39 = arith.constant dense<0.000000e+00> : vector<2x128xf32>
    %168 = tpu.matmul %161, %0, %cst_39 {dimension_numbers = #tpu.dot_dimension_numbers<[1], [0], [0], [1], [0, 0, 1, 1], [], []>} : vector<2x32xf32>, vector<32x128xf32>, vector<2x128xf32> -> vector<2x128xf32>
    %169 = arith.addf %167, %168 : vector<2x128xf32>
    %170 = arith.negf %169 : vector<2x128xf32>
    %171 = math.exp %170 : vector<2x128xf32>
    %cst_40 = arith.constant 1.000000e+00 : f32
    %172 = vector.broadcast %cst_40 : f32 to vector<2x128xf32>
    %173 = arith.addf %172, %171 : vector<2x128xf32>
    %174 = arith.divf %172, %173 : vector<2x128xf32>
    %175 = math.tanh %169 : vector<2x128xf32>
    %176 = vector.extract_strided_slice %174 {offsets = [0, 0], sizes = [2, 32], strides = [1, 1]} : vector<2x128xf32> to vector<2x32xf32>
    %177 = vector.extract_strided_slice %174 {offsets = [0, 32], sizes = [2, 32], strides = [1, 1]} : vector<2x128xf32> to vector<2x32xf32>
    %178 = vector.extract_strided_slice %175 {offsets = [0, 64], sizes = [2, 32], strides = [1, 1]} : vector<2x128xf32> to vector<2x32xf32>
    %179 = vector.extract_strided_slice %174 {offsets = [0, 96], sizes = [2, 32], strides = [1, 1]} : vector<2x128xf32> to vector<2x32xf32>
    %180 = arith.mulf %177, %159 : vector<2x32xf32>
    %181 = arith.mulf %176, %178 : vector<2x32xf32>
    %182 = arith.addf %180, %181 : vector<2x32xf32>
    %183 = math.tanh %182 : vector<2x32xf32>
    %184 = arith.mulf %179, %183 : vector<2x32xf32>
    %185 = arith.index_cast %165 : i32 to index
    %c0_41 = arith.constant 0 : index
    %186 = vector.load %arg8[%185, %c0_41] : memref<16x32xf32, #tpu.memory_space<vmem>>, vector<2x32xf32>
    tpu.vector_store %arg8[%185, %c0_41], %184 {strides = array<i32>} : memref<16x32xf32, #tpu.memory_space<vmem>>, vector<2x32xf32>,
    %c8_i32 = arith.constant 8 : i32
    %c0_42 = arith.constant 0 : index
    %c0_43 = arith.constant 0 : index
    %187 = vector.load %arg10[%c0_42, %c0_43] : memref<4x32xf32, #tpu.memory_space<vmem>>, vector<2x32xf32>
    tpu.vector_store %arg10[%c0_42, %c0_43], %184 {strides = array<i32>} : memref<4x32xf32, #tpu.memory_space<vmem>>, vector<2x32xf32>,
    %c0_44 = arith.constant 0 : index
    %c0_45 = arith.constant 0 : index
    %188 = vector.load %arg2[%c0_44, %c0_45] : memref<32x128xf32, #tpu.memory_space<vmem>>, vector<32x128xf32>
    %c0_46 = arith.constant 0 : index
    %c0_47 = arith.constant 0 : index
    %189 = vector.load %arg3[%c0_46, %c0_47] : memref<32x128xf32, #tpu.memory_space<vmem>>, vector<32x128xf32>
    %c0_48 = arith.constant 0 : index
    %c0_49 = arith.constant 0 : index
    %190 = vector.load %arg4[%c0_48, %c0_49] : memref<1x128xf32, #tpu.memory_space<vmem>>, vector<1x128xf32>
    %c0_50 = arith.constant 0 : index
    %c0_51 = arith.constant 0 : index
    %191 = vector.load %arg8[%c0_50, %c0_51] : memref<16x32xf32, #tpu.memory_space<vmem>>, vector<16x32xf32>
    %cst_52 = arith.constant dense<0.000000e+00> : vector<16x128xf32>
    %192 = tpu.matmul %191, %188, %cst_52 {dimension_numbers = #tpu.dot_dimension_numbers<[1], [0], [0], [1], [0, 0, 1, 1], [], []>} : vector<16x32xf32>, vector<32x128xf32>, vector<16x128xf32> -> vector<16x128xf32>
    %193 = vector.broadcast %190 : vector<1x128xf32> to vector<16x128xf32>
    %194 = arith.addf %192, %193 : vector<16x128xf32>
    %c0_53 = arith.constant 0 : index
    %c0_54 = arith.constant 0 : index
    %195 = vector.load %arg9[%c0_53, %c0_54] : memref<16x128xf32, #tpu.memory_space<vmem>>, vector<16x128xf32>
    tpu.vector_store %arg9[%c0_53, %c0_54], %194 {strides = array<i32>} : memref<16x128xf32, #tpu.memory_space<vmem>>, vector<16x128xf32>,
    %cst_55 = arith.constant 0.000000e+00 : f32
    %196 = vector.broadcast %cst_55 : f32 to vector<2x32xf32>
    %cst_56 = arith.constant 0.000000e+00 : f32
    %197 = vector.broadcast %cst_56 : f32 to vector<2x32xf32>
    %c0_i32_57 = arith.constant 0 : i32
    %c2_i32_58 = arith.constant 2 : i32
    %198 = arith.muli %c0_i32_57, %c2_i32_58 : i32
    %199 = tpu.assume_multiple %198, 2 : i32
    %200 = arith.index_cast %199 : i32 to index
    %c0_59 = arith.constant 0 : index
    %201 = vector.load %arg9[%200, %c0_59] : memref<16x128xf32, #tpu.memory_space<vmem>>, vector<2x128xf32>
    %cst_60 = arith.constant dense<0.000000e+00> : vector<2x128xf32>
    %202 = tpu.matmul %196, %189, %cst_60 {dimension_numbers = #tpu.dot_dimension_numbers<[1], [0], [0], [1], [0, 0, 1, 1], [], []>} : vector<2x32xf32>, vector<32x128xf32>, vector<2x128xf32> -> vector<2x128xf32>
    %203 = arith.addf %201, %202 : vector<2x128xf32>
    %204 = arith.negf %203 : vector<2x128xf32>
    %205 = math.exp %204 : vector<2x128xf32>
    %cst_61 = arith.constant 1.000000e+00 : f32
    %206 = vector.broadcast %cst_61 : f32 to vector<2x128xf32>
    %207 = arith.addf %206, %205 : vector<2x128xf32>
    %208 = arith.divf %206, %207 : vector<2x128xf32>
    %209 = math.tanh %203 : vector<2x128xf32>
    %210 = vector.extract_strided_slice %208 {offsets = [0, 0], sizes = [2, 32], strides = [1, 1]} : vector<2x128xf32> to vector<2x32xf32>
    %211 = vector.extract_strided_slice %208 {offsets = [0, 32], sizes = [2, 32], strides = [1, 1]} : vector<2x128xf32> to vector<2x32xf32>
    %212 = vector.extract_strided_slice %209 {offsets = [0, 64], sizes = [2, 32], strides = [1, 1]} : vector<2x128xf32> to vector<2x32xf32>
    %213 = vector.extract_strided_slice %208 {offsets = [0, 96], sizes = [2, 32], strides = [1, 1]} : vector<2x128xf32> to vector<2x32xf32>
    %214 = arith.mulf %211, %197 : vector<2x32xf32>
    %215 = arith.mulf %210, %212 : vector<2x32xf32>
    %216 = arith.addf %214, %215 : vector<2x32xf32>
    %217 = math.tanh %216 : vector<2x32xf32>
    %218 = arith.mulf %213, %217 : vector<2x32xf32>
    %c1_i32_62 = arith.constant 1 : i32
    %c2_i32_63 = arith.constant 2 : i32
    %219 = arith.muli %c1_i32_62, %c2_i32_63 : i32
    %220 = tpu.assume_multiple %219, 2 : i32
    %221 = arith.index_cast %220 : i32 to index
    %c0_64 = arith.constant 0 : index
    %222 = vector.load %arg9[%221, %c0_64] : memref<16x128xf32, #tpu.memory_space<vmem>>, vector<2x128xf32>
    %cst_65 = arith.constant dense<0.000000e+00> : vector<2x128xf32>
    %223 = tpu.matmul %218, %189, %cst_65 {dimension_numbers = #tpu.dot_dimension_numbers<[1], [0], [0], [1], [0, 0, 1, 1], [], []>} : vector<2x32xf32>, vector<32x128xf32>, vector<2x128xf32> -> vector<2x128xf32>
    %224 = arith.addf %222, %223 : vector<2x128xf32>
    %225 = arith.negf %224 : vector<2x128xf32>
    %226 = math.exp %225 : vector<2x128xf32>
    %cst_66 = arith.constant 1.000000e+00 : f32
    %227 = vector.broadcast %cst_66 : f32 to vector<2x128xf32>
    %228 = arith.addf %227, %226 : vector<2x128xf32>
    %229 = arith.divf %227, %228 : vector<2x128xf32>
    %230 = math.tanh %224 : vector<2x128xf32>
    %231 = vector.extract_strided_slice %229 {offsets = [0, 0], sizes = [2, 32], strides = [1, 1]} : vector<2x128xf32> to vector<2x32xf32>
    %232 = vector.extract_strided_slice %229 {offsets = [0, 32], sizes = [2, 32], strides = [1, 1]} : vector<2x128xf32> to vector<2x32xf32>
    %233 = vector.extract_strided_slice %230 {offsets = [0, 64], sizes = [2, 32], strides = [1, 1]} : vector<2x128xf32> to vector<2x32xf32>
    %234 = vector.extract_strided_slice %229 {offsets = [0, 96], sizes = [2, 32], strides = [1, 1]} : vector<2x128xf32> to vector<2x32xf32>
    %235 = arith.mulf %232, %216 : vector<2x32xf32>
    %236 = arith.mulf %231, %233 : vector<2x32xf32>
    %237 = arith.addf %235, %236 : vector<2x32xf32>
    %238 = math.tanh %237 : vector<2x32xf32>
    %239 = arith.mulf %234, %238 : vector<2x32xf32>
    %c2_i32_67 = arith.constant 2 : i32
    %c2_i32_68 = arith.constant 2 : i32
    %240 = arith.muli %c2_i32_67, %c2_i32_68 : i32
    %241 = tpu.assume_multiple %240, 2 : i32
    %242 = arith.index_cast %241 : i32 to index
    %c0_69 = arith.constant 0 : index
    %243 = vector.load %arg9[%242, %c0_69] : memref<16x128xf32, #tpu.memory_space<vmem>>, vector<2x128xf32>
    %cst_70 = arith.constant dense<0.000000e+00> : vector<2x128xf32>
    %244 = tpu.matmul %239, %189, %cst_70 {dimension_numbers = #tpu.dot_dimension_numbers<[1], [0], [0], [1], [0, 0, 1, 1], [], []>} : vector<2x32xf32>, vector<32x128xf32>, vector<2x128xf32> -> vector<2x128xf32>
    %245 = arith.addf %243, %244 : vector<2x128xf32>
    %246 = arith.negf %245 : vector<2x128xf32>
    %247 = math.exp %246 : vector<2x128xf32>
    %cst_71 = arith.constant 1.000000e+00 : f32
    %248 = vector.broadcast %cst_71 : f32 to vector<2x128xf32>
    %249 = arith.addf %248, %247 : vector<2x128xf32>
    %250 = arith.divf %248, %249 : vector<2x128xf32>
    %251 = math.tanh %245 : vector<2x128xf32>
    %252 = vector.extract_strided_slice %250 {offsets = [0, 0], sizes = [2, 32], strides = [1, 1]} : vector<2x128xf32> to vector<2x32xf32>
    %253 = vector.extract_strided_slice %250 {offsets = [0, 32], sizes = [2, 32], strides = [1, 1]} : vector<2x128xf32> to vector<2x32xf32>
    %254 = vector.extract_strided_slice %251 {offsets = [0, 64], sizes = [2, 32], strides = [1, 1]} : vector<2x128xf32> to vector<2x32xf32>
    %255 = vector.extract_strided_slice %250 {offsets = [0, 96], sizes = [2, 32], strides = [1, 1]} : vector<2x128xf32> to vector<2x32xf32>
    %256 = arith.mulf %253, %237 : vector<2x32xf32>
    %257 = arith.mulf %252, %254 : vector<2x32xf32>
    %258 = arith.addf %256, %257 : vector<2x32xf32>
    %259 = math.tanh %258 : vector<2x32xf32>
    %260 = arith.mulf %255, %259 : vector<2x32xf32>
    %c3_i32_72 = arith.constant 3 : i32
    %c2_i32_73 = arith.constant 2 : i32
    %261 = arith.muli %c3_i32_72, %c2_i32_73 : i32
    %262 = tpu.assume_multiple %261, 2 : i32
    %263 = arith.index_cast %262 : i32 to index
    %c0_74 = arith.constant 0 : index
    %264 = vector.load %arg9[%263, %c0_74] : memref<16x128xf32, #tpu.memory_space<vmem>>, vector<2x128xf32>
    %cst_75 = arith.constant dense<0.000000e+00> : vector<2x128xf32>
    %265 = tpu.matmul %260, %189, %cst_75 {dimension_numbers = #tpu.dot_dimension_numbers<[1], [0], [0], [1], [0, 0, 1, 1], [], []>} : vector<2x32xf32>, vector<32x128xf32>, vector<2x128xf32> -> vector<2x128xf32>
    %266 = arith.addf %264, %265 : vector<2x128xf32>
    %267 = arith.negf %266 : vector<2x128xf32>
    %268 = math.exp %267 : vector<2x128xf32>
    %cst_76 = arith.constant 1.000000e+00 : f32
    %269 = vector.broadcast %cst_76 : f32 to vector<2x128xf32>
    %270 = arith.addf %269, %268 : vector<2x128xf32>
    %271 = arith.divf %269, %270 : vector<2x128xf32>
    %272 = math.tanh %266 : vector<2x128xf32>
    %273 = vector.extract_strided_slice %271 {offsets = [0, 0], sizes = [2, 32], strides = [1, 1]} : vector<2x128xf32> to vector<2x32xf32>
    %274 = vector.extract_strided_slice %271 {offsets = [0, 32], sizes = [2, 32], strides = [1, 1]} : vector<2x128xf32> to vector<2x32xf32>
    %275 = vector.extract_strided_slice %272 {offsets = [0, 64], sizes = [2, 32], strides = [1, 1]} : vector<2x128xf32> to vector<2x32xf32>
    %276 = vector.extract_strided_slice %271 {offsets = [0, 96], sizes = [2, 32], strides = [1, 1]} : vector<2x128xf32> to vector<2x32xf32>
    %277 = arith.mulf %274, %258 : vector<2x32xf32>
    %278 = arith.mulf %273, %275 : vector<2x32xf32>
    %279 = arith.addf %277, %278 : vector<2x32xf32>
    %280 = math.tanh %279 : vector<2x32xf32>
    %281 = arith.mulf %276, %280 : vector<2x32xf32>
    %c4_i32_77 = arith.constant 4 : i32
    %c2_i32_78 = arith.constant 2 : i32
    %282 = arith.muli %c4_i32_77, %c2_i32_78 : i32
    %283 = tpu.assume_multiple %282, 2 : i32
    %284 = arith.index_cast %283 : i32 to index
    %c0_79 = arith.constant 0 : index
    %285 = vector.load %arg9[%284, %c0_79] : memref<16x128xf32, #tpu.memory_space<vmem>>, vector<2x128xf32>
    %cst_80 = arith.constant dense<0.000000e+00> : vector<2x128xf32>
    %286 = tpu.matmul %281, %189, %cst_80 {dimension_numbers = #tpu.dot_dimension_numbers<[1], [0], [0], [1], [0, 0, 1, 1], [], []>} : vector<2x32xf32>, vector<32x128xf32>, vector<2x128xf32> -> vector<2x128xf32>
    %287 = arith.addf %285, %286 : vector<2x128xf32>
    %288 = arith.negf %287 : vector<2x128xf32>
    %289 = math.exp %288 : vector<2x128xf32>
    %cst_81 = arith.constant 1.000000e+00 : f32
    %290 = vector.broadcast %cst_81 : f32 to vector<2x128xf32>
    %291 = arith.addf %290, %289 : vector<2x128xf32>
    %292 = arith.divf %290, %291 : vector<2x128xf32>
    %293 = math.tanh %287 : vector<2x128xf32>
    %294 = vector.extract_strided_slice %292 {offsets = [0, 0], sizes = [2, 32], strides = [1, 1]} : vector<2x128xf32> to vector<2x32xf32>
    %295 = vector.extract_strided_slice %292 {offsets = [0, 32], sizes = [2, 32], strides = [1, 1]} : vector<2x128xf32> to vector<2x32xf32>
    %296 = vector.extract_strided_slice %293 {offsets = [0, 64], sizes = [2, 32], strides = [1, 1]} : vector<2x128xf32> to vector<2x32xf32>
    %297 = vector.extract_strided_slice %292 {offsets = [0, 96], sizes = [2, 32], strides = [1, 1]} : vector<2x128xf32> to vector<2x32xf32>
    %298 = arith.mulf %295, %279 : vector<2x32xf32>
    %299 = arith.mulf %294, %296 : vector<2x32xf32>
    %300 = arith.addf %298, %299 : vector<2x32xf32>
    %301 = math.tanh %300 : vector<2x32xf32>
    %302 = arith.mulf %297, %301 : vector<2x32xf32>
    %c5_i32_82 = arith.constant 5 : i32
    %c2_i32_83 = arith.constant 2 : i32
    %303 = arith.muli %c5_i32_82, %c2_i32_83 : i32
    %304 = tpu.assume_multiple %303, 2 : i32
    %305 = arith.index_cast %304 : i32 to index
    %c0_84 = arith.constant 0 : index
    %306 = vector.load %arg9[%305, %c0_84] : memref<16x128xf32, #tpu.memory_space<vmem>>, vector<2x128xf32>
    %cst_85 = arith.constant dense<0.000000e+00> : vector<2x128xf32>
    %307 = tpu.matmul %302, %189, %cst_85 {dimension_numbers = #tpu.dot_dimension_numbers<[1], [0], [0], [1], [0, 0, 1, 1], [], []>} : vector<2x32xf32>, vector<32x128xf32>, vector<2x128xf32> -> vector<2x128xf32>
    %308 = arith.addf %306, %307 : vector<2x128xf32>
    %309 = arith.negf %308 : vector<2x128xf32>
    %310 = math.exp %309 : vector<2x128xf32>
    %cst_86 = arith.constant 1.000000e+00 : f32
    %311 = vector.broadcast %cst_86 : f32 to vector<2x128xf32>
    %312 = arith.addf %311, %310 : vector<2x128xf32>
    %313 = arith.divf %311, %312 : vector<2x128xf32>
    %314 = math.tanh %308 : vector<2x128xf32>
    %315 = vector.extract_strided_slice %313 {offsets = [0, 0], sizes = [2, 32], strides = [1, 1]} : vector<2x128xf32> to vector<2x32xf32>
    %316 = vector.extract_strided_slice %313 {offsets = [0, 32], sizes = [2, 32], strides = [1, 1]} : vector<2x128xf32> to vector<2x32xf32>
    %317 = vector.extract_strided_slice %314 {offsets = [0, 64], sizes = [2, 32], strides = [1, 1]} : vector<2x128xf32> to vector<2x32xf32>
    %318 = vector.extract_strided_slice %313 {offsets = [0, 96], sizes = [2, 32], strides = [1, 1]} : vector<2x128xf32> to vector<2x32xf32>
    %319 = arith.mulf %316, %300 : vector<2x32xf32>
    %320 = arith.mulf %315, %317 : vector<2x32xf32>
    %321 = arith.addf %319, %320 : vector<2x32xf32>
    %322 = math.tanh %321 : vector<2x32xf32>
    %323 = arith.mulf %318, %322 : vector<2x32xf32>
    %c6_i32_87 = arith.constant 6 : i32
    %c2_i32_88 = arith.constant 2 : i32
    %324 = arith.muli %c6_i32_87, %c2_i32_88 : i32
    %325 = tpu.assume_multiple %324, 2 : i32
    %326 = arith.index_cast %325 : i32 to index
    %c0_89 = arith.constant 0 : index
    %327 = vector.load %arg9[%326, %c0_89] : memref<16x128xf32, #tpu.memory_space<vmem>>, vector<2x128xf32>
    %cst_90 = arith.constant dense<0.000000e+00> : vector<2x128xf32>
    %328 = tpu.matmul %323, %189, %cst_90 {dimension_numbers = #tpu.dot_dimension_numbers<[1], [0], [0], [1], [0, 0, 1, 1], [], []>} : vector<2x32xf32>, vector<32x128xf32>, vector<2x128xf32> -> vector<2x128xf32>
    %329 = arith.addf %327, %328 : vector<2x128xf32>
    %330 = arith.negf %329 : vector<2x128xf32>
    %331 = math.exp %330 : vector<2x128xf32>
    %cst_91 = arith.constant 1.000000e+00 : f32
    %332 = vector.broadcast %cst_91 : f32 to vector<2x128xf32>
    %333 = arith.addf %332, %331 : vector<2x128xf32>
    %334 = arith.divf %332, %333 : vector<2x128xf32>
    %335 = math.tanh %329 : vector<2x128xf32>
    %336 = vector.extract_strided_slice %334 {offsets = [0, 0], sizes = [2, 32], strides = [1, 1]} : vector<2x128xf32> to vector<2x32xf32>
    %337 = vector.extract_strided_slice %334 {offsets = [0, 32], sizes = [2, 32], strides = [1, 1]} : vector<2x128xf32> to vector<2x32xf32>
    %338 = vector.extract_strided_slice %335 {offsets = [0, 64], sizes = [2, 32], strides = [1, 1]} : vector<2x128xf32> to vector<2x32xf32>
    %339 = vector.extract_strided_slice %334 {offsets = [0, 96], sizes = [2, 32], strides = [1, 1]} : vector<2x128xf32> to vector<2x32xf32>
    %340 = arith.mulf %337, %321 : vector<2x32xf32>
    %341 = arith.mulf %336, %338 : vector<2x32xf32>
    %342 = arith.addf %340, %341 : vector<2x32xf32>
    %343 = math.tanh %342 : vector<2x32xf32>
    %344 = arith.mulf %339, %343 : vector<2x32xf32>
    %c7_i32_92 = arith.constant 7 : i32
    %c2_i32_93 = arith.constant 2 : i32
    %345 = arith.muli %c7_i32_92, %c2_i32_93 : i32
    %346 = tpu.assume_multiple %345, 2 : i32
    %347 = arith.index_cast %346 : i32 to index
    %c0_94 = arith.constant 0 : index
    %348 = vector.load %arg9[%347, %c0_94] : memref<16x128xf32, #tpu.memory_space<vmem>>, vector<2x128xf32>
    %cst_95 = arith.constant dense<0.000000e+00> : vector<2x128xf32>
    %349 = tpu.matmul %344, %189, %cst_95 {dimension_numbers = #tpu.dot_dimension_numbers<[1], [0], [0], [1], [0, 0, 1, 1], [], []>} : vector<2x32xf32>, vector<32x128xf32>, vector<2x128xf32> -> vector<2x128xf32>
    %350 = arith.addf %348, %349 : vector<2x128xf32>
    %351 = arith.negf %350 : vector<2x128xf32>
    %352 = math.exp %351 : vector<2x128xf32>
    %cst_96 = arith.constant 1.000000e+00 : f32
    %353 = vector.broadcast %cst_96 : f32 to vector<2x128xf32>
    %354 = arith.addf %353, %352 : vector<2x128xf32>
    %355 = arith.divf %353, %354 : vector<2x128xf32>
    %356 = math.tanh %350 : vector<2x128xf32>
    %357 = vector.extract_strided_slice %355 {offsets = [0, 0], sizes = [2, 32], strides = [1, 1]} : vector<2x128xf32> to vector<2x32xf32>
    %358 = vector.extract_strided_slice %355 {offsets = [0, 32], sizes = [2, 32], strides = [1, 1]} : vector<2x128xf32> to vector<2x32xf32>
    %359 = vector.extract_strided_slice %356 {offsets = [0, 64], sizes = [2, 32], strides = [1, 1]} : vector<2x128xf32> to vector<2x32xf32>
    %360 = vector.extract_strided_slice %355 {offsets = [0, 96], sizes = [2, 32], strides = [1, 1]} : vector<2x128xf32> to vector<2x32xf32>
    %361 = arith.mulf %358, %342 : vector<2x32xf32>
    %362 = arith.mulf %357, %359 : vector<2x32xf32>
    %363 = arith.addf %361, %362 : vector<2x32xf32>
    %364 = math.tanh %363 : vector<2x32xf32>
    %365 = arith.mulf %360, %364 : vector<2x32xf32>
    %c8_i32_97 = arith.constant 8 : i32
    %c2 = arith.constant 2 : index
    %c0_98 = arith.constant 0 : index
    %366 = vector.load %arg10[%c2, %c0_98] : memref<4x32xf32, #tpu.memory_space<vmem>>, vector<2x32xf32>
    tpu.vector_store %arg10[%c2, %c0_98], %365 {strides = array<i32>} : memref<4x32xf32, #tpu.memory_space<vmem>>, vector<2x32xf32>,
    %c0_99 = arith.constant 0 : index
    %c0_100 = arith.constant 0 : index
    %367 = vector.load %arg10[%c0_99, %c0_100] : memref<4x32xf32, #tpu.memory_space<vmem>>, vector<4x32xf32>
    %c0_101 = arith.constant 0 : index
    %c0_102 = arith.constant 0 : index
    %368 = vector.load %arg5[%c0_101, %c0_102] : memref<32x3xf32, #tpu.memory_space<vmem>>, vector<32x3xf32>
    %cst_103 = arith.constant dense<0.000000e+00> : vector<4x3xf32>
    %369 = tpu.matmul %367, %368, %cst_103 {dimension_numbers = #tpu.dot_dimension_numbers<[1], [0], [0], [1], [0, 0, 1, 1], [], []>} : vector<4x32xf32>, vector<32x3xf32>, vector<4x3xf32> -> vector<4x3xf32>
    %c0_104 = arith.constant 0 : index
    %c0_105 = arith.constant 0 : index
    %370 = vector.load %arg6[%c0_104, %c0_105] : memref<1x3xf32, #tpu.memory_space<vmem>>, vector<1x3xf32>
    %371 = vector.broadcast %370 : vector<1x3xf32> to vector<4x3xf32>
    %372 = arith.addf %369, %371 : vector<4x3xf32>
    %c0_106 = arith.constant 0 : index
    %c0_107 = arith.constant 0 : index
    %373 = vector.load %arg7[%c0_106, %c0_107] : memref<4x3xf32, #tpu.memory_space<vmem>>, vector<4x3xf32>
    tpu.vector_store %arg7[%c0_106, %c0_107], %372 {strides = array<i32>} : memref<4x3xf32, #tpu.memory_space<vmem>>, vector<4x3xf32>,
    return
  }
}

</mosaic_0001>

<bundles_post_ra>
// kernel: lstm_forward.1
= control target key start
LH: loop header
LB: loop body
LE: loop exit
PB: predicated region body
PF: predicated region fallthrough
CT: control target
= control target key end

     0   :  { %v2488_v3 = vmov 0.0|0.0   ;;  %vm2489_vm0 = vmmov 0   ;;  %v2490_v6 = vmov 0.0   ;;  %s2825_s0 = inlined_call_operand.vmem [shape: f32[16,128], index: 0, kind: input, shape index: {}]   ;;  %s2826_s1 = inlined_call_operand.vmem [shape: f32[32,128], index: 1, kind: input, shape index: {}]   ;;  %s2827_s2 = inlined_call_operand.vmem [shape: f32[32,128], index: 2, kind: input, shape index: {}]   ;;  %s2828_s3 = inlined_call_operand.vmem [shape: f32[32,128], index: 3, kind: input, shape index: {}]   ;;  %s2829_s4 = inlined_call_operand.vmem [shape: f32[1,128], index: 4, kind: input, shape index: {}]   ;;  %s2830_s5 = inlined_call_operand.vmem [shape: f32[32,3], index: 5, kind: input, shape index: {}]   ;;  %s2831_s6 = inlined_call_operand.vmem [shape: f32[1,3], index: 6, kind: input, shape index: {}]   ;;  %s2832_s7 = inlined_call_operand.hbm [shape: f32[4,3], index: 7, kind: output, shape index: {}]  }
   0x1   :  { %v27_v0 = vld [vmem:[%s2826_s1] sm:$0xff]  ;;  %v28_v1 = vld [vmem:[%s2826_s1 + $0x8] sm:$0xff]  ;;  %v29_v2 = vld [vmem:[%s2826_s1 + $0x10] sm:$0xff]  ;;  %2220 = vmatprep.subr.bf16.mxu0 %v2488_v3  ;;  %2030 = vmatprep.mubr.msk.f32.mxu0 %vm2489_vm0, %v2490_v6 }
   0x2   :  { %v2544_v4 = vpack.c.bf16 %v28_v1, %v27_v0  ;;  %v30_v5 = vld [vmem:[%s2826_s1 + $0x18] sm:$0xff] }
   0x3   :  { %12 = vsyncpa [#allocation6], 0  ;;  %2226 = vmatprep.subr.bf16.mxu1 %v2488_v3  ;;  %2041 = vmatprep.mubr.msk.f32.mxu1 %vm2489_vm0, %v2490_v6  ;;  %v2555_v7 = vpack.c.bf16 %v30_v5, %v29_v2  ;;  %v31_v8 = vld [vmem:[%s2825_s0] sm:$0x3]  ;;  %s2491_s10 = smov 64   ;;  %s2492_s11 = smov 32  }
   0x4   :  { %2222 = vmatpush3.bf16.msra.mxu0 %v2544_v4  ;;  %2228 = vmatpush3.bf16.msra.mxu1 %v2544_v4  ;;  %vm135_vm1 = vcmask 254976   ;;  %vm32_vm2 = vcmask 261120   ;;  %v1890_v26 = vld [vmem:[%s2825_s0 + $0x2] sm:$0x3]  ;;  %v1893_v44 = vld [vmem:[%s2825_s0 + $0x4] sm:$0x3] }
   0x5   :  { %2223 = vmatprep.subr.bf16.mxu0 %v2488_v3  ;;  %2229 = vmatprep.subr.bf16.mxu1 %v2488_v3  ;;  %v1896_v62 = vld [vmem:[%s2825_s0 + $0x6] sm:$0x3]  ;;  %vm1873_vm3 = vcmask 19456  }
   0x8   :  { %2225 = vmatpush3.bf16.msra.mxu0 %v2555_v7  ;;  %2231 = vmatpush3.bf16.msra.mxu1 %v2555_v7 }
   0x9   :  { %2232 = vmatprep.subr.bf16.mxu0 %v2488_v3  ;;  %2238 = vmatprep.subr.bf16.mxu1 %v2488_v3 }
   0xb   :  { %2031 = vmatmul.mubr.f32.vlgmr.msra.gmra.mrb[0].mxu0 %v2490_v6 }
   0xc   :  { %2234 = vmatpush3.bf16.msra.mxu0 %v2544_v4  ;;  %2052 = vmatprep.mubr.msk.f32.mxu0 %vm2489_vm0, %v2490_v6 }
   0xd   :  { %2235 = vmatprep.subr.bf16.mxu0 %v2488_v3 }
  0x10   :  { %2237 = vmatpush3.bf16.msra.mxu0 %v2555_v7 }
  0x11   :  { %2244 = vmatprep.subr.bf16.mxu0 %v2488_v3 }
  0xde   :  { %v102_v9 = vpop.f32.mrb[0].mxu0 }
  0xdf   :  { %v106_v10 = vadd.f32 %v102_v9, %v31_v8  ;;  %v2032_v11 = vpop.f32.mrb[1].mxu0 }
  0xe1   :  { %2336 = vtanh.f32 %v106_v10  ;;  %v1889_v13 = vmul.f32 -1.442695, %v106_v10 }
  0xe3   :  { %2338 = vpow2.f32 %v1889_v13 }
  0xeb   :  { %v2337_v12 = vpop.eup %2336 }
  0xec   :  { %116 = vrot.lane.b32.xlu0 %v2337_v12, %s2491_s10 }
  0xed   :  { %v2339_v14 = vpop.eup %2338 }
  0xee   :  { %v110_v15 = vadd.f32 1.0, %v2339_v14 }
  0xf0   :  { %2340 = vrcp.f32 %v110_v15 }
  0xfa   :  { %v2341_v16 = vpop.eup %2340 }
  0xfb   :  { %v114_v19 = vmul.f32 0.0, %v2341_v16 }
 0x15e   :  { %v117_v17 = vpop.permute.xlu0 %116 }
 0x15f   :  { %v119_v18 = vmul.f32 %v2341_v16, %v117_v17 }
 0x161   :  { %121 = vrot.lane.b32.xlu0 %v119_v18, %s2492_s11 }
 0x1d3   :  { %v122_v20 = vpop.permute.xlu0 %121 }
 0x1d4   :  { %v124_v21 = vadd.f32 %v122_v20, %v114_v19  ;;  %v1899_v20 = vld [vmem:[%s2825_s0 + $0x8] sm:$0x3] }
 0x1d6   :  { %2342 = vtanh.f32 %v124_v21 }
 0x1e0   :  { %v2343_v22 = vpop.eup %2342 }
 0x1e1   :  { %127 = vrot.lane.b32.xlu1 %v2343_v22, %s2491_s10 }
 0x253   :  { %v128_v23 = vpop.permute.xlu1 %127 }
 0x254   :  { %v130_v24 = vmul.f32 %v2341_v16, %v128_v23 }
 0x256   :  { %132 = vrot.lane.b32.xlu1 %v130_v24, %s2492_s11 }
 0x2c8   :  { %v133_v25 = vpop.permute.xlu1 %132 }
 0x2c9   :  { %136 = vst.msk [vmem:[#allocation2] sm:$0x3] %vm135_vm1, %v133_v25  ;;  %2042 = vmatmul.mubr.msk.f32.vlgmr.msra.gmra.mrb[0].mxu1 %vm32_vm2, %v133_v25 }
 0x2ca   :  { %2240 = vmatpush3.bf16.msra.mxu1 %v2544_v4  ;;  %2063 = vmatprep.mubr.msk.f32.mxu1 %vm2489_vm0, %v2490_v6 }
 0x2cb   :  { %2241 = vmatprep.subr.bf16.mxu1 %v2488_v3 }
 0x2ce   :  { %2243 = vmatpush3.bf16.msra.mxu1 %v2555_v7 }
 0x2cf   :  { %2250 = vmatprep.subr.bf16.mxu1 %v2488_v3 }
 0x39c   :  { %v207_v27 = vpop.f32.mrb[0].mxu1 }
 0x39d   :  { %v211_v28 = vadd.f32 %v1890_v26, %v207_v27  ;;  %v2043_v29 = vpop.f32.mrb[1].mxu1 }
 0x39f   :  { %2344 = vtanh.f32 %v211_v28  ;;  %v1892_v31 = vmul.f32 -1.442695, %v211_v28 }
 0x3a1   :  { %2346 = vpow2.f32 %v1892_v31 }
 0x3a9   :  { %v2345_v30 = vpop.eup %2344 }
 0x3aa   :  { %221 = vrot.lane.b32.xlu0 %v2345_v30, %s2491_s10 }
 0x3ab   :  { %v2347_v32 = vpop.eup %2346 }
 0x3ac   :  { %v215_v33 = vadd.f32 1.0, %v2347_v32 }
 0x3ae   :  { %2348 = vrcp.f32 %v215_v33 }
 0x3b8   :  { %v2349_v34 = vpop.eup %2348 }
 0x3b9   :  { %v219_v37 = vmul.f32 %v2349_v34, %v124_v21 }
 0x41c   :  { %v222_v35 = vpop.permute.xlu0 %221 }
 0x41d   :  { %v224_v36 = vmul.f32 %v2349_v34, %v222_v35 }
 0x41f   :  { %226 = vrot.lane.b32.xlu1 %v224_v36, %s2492_s11 }
 0x491   :  { %v227_v38 = vpop.permute.xlu1 %226 }
 0x492   :  { %v229_v39 = vadd.f32 %v227_v38, %v219_v37  ;;  %v1902_v38 = vld [vmem:[%s2825_s0 + $0xa] sm:$0x3] }
 0x494   :  { %2350 = vtanh.f32 %v229_v39 }
 0x49e   :  { %v2351_v40 = vpop.eup %2350 }
 0x49f   :  { %232 = vrot.lane.b32.xlu0 %v2351_v40, %s2491_s10 }
 0x511   :  { %v233_v41 = vpop.permute.xlu0 %232 }
 0x512   :  { %v235_v42 = vmul.f32 %v2349_v34, %v233_v41 }
 0x514   :  { %237 = vrot.lane.b32.xlu1 %v235_v42, %s2492_s11 }
 0x586   :  { %v238_v43 = vpop.permute.xlu1 %237 }
 0x587   :  { %241 = vst.msk [vmem:[#allocation2 + $0x2] sm:$0x3] %vm135_vm1, %v238_v43  ;;  %2053 = vmatmul.mubr.msk.f32.vlgmr.msra.gmra.mrb[2].mxu0 %vm32_vm2, %v238_v43 }
 0x588   :  { %2246 = vmatpush3.bf16.msra.mxu0 %v2544_v4  ;;  %2074 = vmatprep.mubr.msk.f32.mxu0 %vm2489_vm0, %v2490_v6 }
 0x589   :  { %2247 = vmatprep.subr.bf16.mxu0 %v2488_v3 }
 0x58c   :  { %2249 = vmatpush3.bf16.msra.mxu0 %v2555_v7 }
 0x58d   :  { %2256 = vmatprep.subr.bf16.mxu0 %v2488_v3 }
 0x65a   :  { %v312_v45 = vpop.f32.mrb[2].mxu0 }
 0x65b   :  { %v316_v46 = vadd.f32 %v1893_v44, %v312_v45  ;;  %v2054_v47 = vpop.f32.mrb[3].mxu0 }
 0x65d   :  { %2352 = vtanh.f32 %v316_v46  ;;  %v1895_v49 = vmul.f32 -1.442695, %v316_v46 }
 0x65f   :  { %2354 = vpow2.f32 %v1895_v49 }
 0x667   :  { %v2353_v48 = vpop.eup %2352 }
 0x668   :  { %326 = vrot.lane.b32.xlu0 %v2353_v48, %s2491_s10 }
 0x669   :  { %v2355_v50 = vpop.eup %2354 }
 0x66a   :  { %v320_v51 = vadd.f32 1.0, %v2355_v50 }
 0x66c   :  { %2356 = vrcp.f32 %v320_v51 }
 0x676   :  { %v2357_v52 = vpop.eup %2356 }
 0x677   :  { %v324_v55 = vmul.f32 %v2357_v52, %v229_v39 }
 0x6da   :  { %v327_v53 = vpop.permute.xlu0 %326 }
 0x6db   :  { %v329_v54 = vmul.f32 %v2357_v52, %v327_v53 }
 0x6dd   :  { %331 = vrot.lane.b32.xlu1 %v329_v54, %s2492_s11 }
 0x74f   :  { %v332_v56 = vpop.permute.xlu1 %331 }
 0x750   :  { %v334_v57 = vadd.f32 %v332_v56, %v324_v55  ;;  %v1905_v55 = vld [vmem:[%s2825_s0 + $0xc] sm:$0x3] }
 0x752   :  { %2358 = vtanh.f32 %v334_v57 }
 0x75c   :  { %v2359_v58 = vpop.eup %2358 }
 0x75d   :  { %337 = vrot.lane.b32.xlu0 %v2359_v58, %s2491_s10 }
 0x7cf   :  { %v338_v59 = vpop.permute.xlu0 %337 }
 0x7d0   :  { %v340_v60 = vmul.f32 %v2357_v52, %v338_v59 }
 0x7d2   :  { %342 = vrot.lane.b32.xlu1 %v340_v60, %s2492_s11 }
 0x844   :  { %v343_v61 = vpop.permute.xlu1 %342 }
 0x845   :  { %346 = vst.msk [vmem:[#allocation2 + $0x4] sm:$0x3] %vm135_vm1, %v343_v61  ;;  %2064 = vmatmul.mubr.msk.f32.vlgmr.msra.gmra.mrb[2].mxu1 %vm32_vm2, %v343_v61 }
 0x846   :  { %2252 = vmatpush3.bf16.msra.mxu1 %v2544_v4  ;;  %2085 = vmatprep.mubr.msk.f32.mxu1 %vm2489_vm0, %v2490_v6 }
 0x847   :  { %2253 = vmatprep.subr.bf16.mxu1 %v2488_v3 }
 0x84a   :  { %2255 = vmatpush3.bf16.msra.mxu1 %v2555_v7 }
 0x84b   :  { %2262 = vmatprep.subr.bf16.mxu1 %v2488_v3 }
 0x918   :  { %v417_v63 = vpop.f32.mrb[2].mxu1 }
 0x919   :  { %v421_v0 = vadd.f32 %v1896_v62, %v417_v63  ;;  %v2065_v1 = vpop.f32.mrb[3].mxu1 }
 0x91b   :  { %2360 = vtanh.f32 %v421_v0  ;;  %v1898_v5 = vmul.f32 -1.442695, %v421_v0 }
 0x91d   :  { %2362 = vpow2.f32 %v1898_v5 }
 0x925   :  { %v2361_v2 = vpop.eup %2360 }
 0x926   :  { %431 = vrot.lane.b32.xlu0 %v2361_v2, %s2491_s10 }
 0x927   :  { %v2363_v8 = vpop.eup %2362 }
 0x928   :  { %v425_v9 = vadd.f32 1.0, %v2363_v8 }
 0x92a   :  { %2364 = vrcp.f32 %v425_v9 }
 0x934   :  { %v2365_v10 = vpop.eup %2364 }
 0x935   :  { %v429_v13 = vmul.f32 %v2365_v10, %v334_v57 }
 0x998   :  { %v432_v11 = vpop.permute.xlu0 %431 }
 0x999   :  { %v434_v12 = vmul.f32 %v2365_v10, %v432_v11 }
 0x99b   :  { %436 = vrot.lane.b32.xlu1 %v434_v12, %s2492_s11 }
 0xa0d   :  { %v437_v14 = vpop.permute.xlu1 %436 }
 0xa0e   :  { %v439_v15 = vadd.f32 %v437_v14, %v429_v13  ;;  %v1908_v13 = vld [vmem:[%s2825_s0 + $0xe] sm:$0x3] }
 0xa10   :  { %2366 = vtanh.f32 %v439_v15 }
 0xa1a   :  { %v2367_v16 = vpop.eup %2366 }
 0xa1b   :  { %442 = vrot.lane.b32.xlu0 %v2367_v16, %s2491_s10 }
 0xa8d   :  { %v443_v17 = vpop.permute.xlu0 %442 }
 0xa8e   :  { %v445_v18 = vmul.f32 %v2365_v10, %v443_v17 }
 0xa90   :  { %447 = vrot.lane.b32.xlu1 %v445_v18, %s2492_s11 }
 0xb02   :  { %v448_v19 = vpop.permute.xlu1 %447 }
 0xb03   :  { %451 = vst.msk [vmem:[#allocation2 + $0x6] sm:$0x3] %vm135_vm1, %v448_v19  ;;  %2075 = vmatmul.mubr.msk.f32.vlgmr.msra.gmra.mrb[4].mxu0 %vm32_vm2, %v448_v19 }
 0xb04   :  { %2258 = vmatpush3.bf16.msra.mxu0 %v2544_v4  ;;  %2096 = vmatprep.mubr.msk.f32.mxu0 %vm2489_vm0, %v2490_v6 }
 0xb05   :  { %2259 = vmatprep.subr.bf16.mxu0 %v2488_v3 }
 0xb08   :  { %2261 = vmatpush3.bf16.msra.mxu0 %v2555_v7 }
 0xb0a   :  { %v882_v54 = vld [vmem:[#allocation2] sm:$0xff] }
 0xbd6   :  { %v522_v21 = vpop.f32.mrb[4].mxu0 }
 0xbd7   :  { %v526_v22 = vadd.f32 %v1899_v20, %v522_v21  ;;  %v2076_v23 = vpop.f32.mrb[5].mxu0 }
 0xbd9   :  { %2368 = vtanh.f32 %v526_v22  ;;  %v1901_v25 = vmul.f32 -1.442695, %v526_v22 }
 0xbdb   :  { %2370 = vpow2.f32 %v1901_v25 }
 0xbe3   :  { %v2369_v24 = vpop.eup %2368 }
 0xbe4   :  { %536 = vrot.lane.b32.xlu0 %v2369_v24, %s2491_s10 }
 0xbe5   :  { %v2371_v26 = vpop.eup %2370 }
 0xbe6   :  { %v530_v27 = vadd.f32 1.0, %v2371_v26 }
 0xbe8   :  { %2372 = vrcp.f32 %v530_v27 }
 0xbf2   :  { %v2373_v28 = vpop.eup %2372 }
 0xbf3   :  { %v534_v31 = vmul.f32 %v2373_v28, %v439_v15 }
 0xc56   :  { %v537_v29 = vpop.permute.xlu0 %536 }
 0xc57   :  { %v539_v30 = vmul.f32 %v2373_v28, %v537_v29  ;;  %v874_v29 = vld [vmem:[%s2827_s2 + $0x8] sm:$0xff] }
 0xc59   :  { %541 = vrot.lane.b32.xlu1 %v539_v30, %s2492_s11 }
 0xccb   :  { %v542_v32 = vpop.permute.xlu1 %541 }
 0xccc   :  { %v544_v33 = vadd.f32 %v542_v32, %v534_v31  ;;  %v875_v31 = vld [vmem:[%s2827_s2 + $0x10] sm:$0xff]  ;;  %v876_v32 = vld [vmem:[%s2827_s2 + $0x18] sm:$0xff] }
 0xcce   :  { %2374 = vtanh.f32 %v544_v33 }
 0xcd8   :  { %v2375_v34 = vpop.eup %2374 }
 0xcd9   :  { %547 = vrot.lane.b32.xlu0 %v2375_v34, %s2491_s10  ;;  %v877_v34 = vld [vmem:[%s2828_s3] sm:$0xff] }
 0xd4b   :  { %v548_v35 = vpop.permute.xlu0 %547 }
 0xd4c   :  { %v550_v36 = vmul.f32 %v2373_v28, %v548_v35  ;;  %v873_v28 = vld [vmem:[%s2827_s2] sm:$0xff]  ;;  %v878_v35 = vld [vmem:[%s2828_s3 + $0x8] sm:$0xff] }
 0xd4d   :  { %v2268_v30 = vpack.c.bf16 %v874_v29, %v873_v28 }
 0xd4e   :  { %552 = vrot.lane.b32.xlu1 %v550_v36, %s2492_s11  ;;  %v879_v36 = vld [vmem:[%s2828_s3 + $0x10] sm:$0xff] }
 0xd4f   :  { %2269 = vmatprep.subr.bf16.mxu0 %v2268_v30 }
 0xdc0   :  { %v553_v37 = vpop.permute.xlu1 %552 }
 0xdc1   :  { %556 = vst.msk [vmem:[#allocation2 + $0x8] sm:$0x3] %vm135_vm1, %v553_v37  ;;  %2086 = vmatmul.mubr.msk.f32.vlgmr.msra.gmra.mrb[4].mxu1 %vm32_vm2, %v553_v37  ;;  %v2694_v37 = vpack.c.bf16 %v878_v35, %v877_v34 }
 0xdc2   :  { %2264 = vmatpush3.bf16.msra.mxu1 %v2544_v4  ;;  %2107 = vmatprep.mubr.msk.f32.mxu1 %vm2489_vm0, %v2490_v6 }
 0xdc3   :  { %2265 = vmatprep.subr.bf16.mxu1 %v2488_v3 }
 0xdc6   :  { %2267 = vmatpush3.bf16.msra.mxu1 %v2555_v7 }
 0xdc7   :  { %2276 = vmatprep.subr.bf16.mxu1 %v2488_v3 }
 0xe94   :  { %v627_v39 = vpop.f32.mrb[4].mxu1 }
 0xe95   :  { %v631_v40 = vadd.f32 %v1902_v38, %v627_v39  ;;  %v2087_v41 = vpop.f32.mrb[5].mxu1  ;;  %v880_v38 = vld [vmem:[%s2828_s3 + $0x18] sm:$0xff] }
 0xe96   :  { %v2700_v41 = vpack.c.bf16 %v880_v38, %v879_v36 }
 0xe97   :  { %2376 = vtanh.f32 %v631_v40  ;;  %v1904_v4 = vmul.f32 -1.442695, %v631_v40 }
 0xe99   :  { %2378 = vpow2.f32 %v1904_v4 }
 0xea1   :  { %v2377_v42 = vpop.eup %2376 }
 0xea2   :  { %641 = vrot.lane.b32.xlu0 %v2377_v42, %s2491_s10 }
 0xea3   :  { %v2379_v43 = vpop.eup %2378 }
 0xea4   :  { %v635_v44 = vadd.f32 1.0, %v2379_v43 }
 0xea6   :  { %2380 = vrcp.f32 %v635_v44 }
 0xeb0   :  { %v2381_v45 = vpop.eup %2380 }
 0xeb1   :  { %v639_v47 = vmul.f32 %v2381_v45, %v544_v33  ;;  %v2272_v33 = vpack.c.bf16 %v876_v32, %v875_v31 }
 0xf14   :  { %v642_v7 = vpop.permute.xlu0 %641 }
 0xf15   :  { %v644_v46 = vmul.f32 %v2381_v45, %v642_v7 }
 0xf17   :  { %646 = vrot.lane.b32.xlu1 %v644_v46, %s2492_s11 }
 0xf89   :  { %v647_v48 = vpop.permute.xlu1 %646 }
 0xf8a   :  { %v649_v49 = vadd.f32 %v647_v48, %v639_v47 }
 0xf8c   :  { %2382 = vtanh.f32 %v649_v49 }
 0xf96   :  { %v2383_v50 = vpop.eup %2382 }
 0xf97   :  { %652 = vrot.lane.b32.xlu0 %v2383_v50, %s2491_s10 }
0x1009   :  { %v653_v51 = vpop.permute.xlu0 %652 }
0x100a   :  { %v655_v52 = vmul.f32 %v2381_v45, %v653_v51  ;;  %v1911_v45 = vld [vmem:[%s2829_s4] ss:$0 sm:$0xff] }
0x100c   :  { %657 = vrot.lane.b32.xlu1 %v655_v52, %s2492_s11 }
0x107e   :  { %v658_v53 = vpop.permute.xlu1 %657 }
0x107f   :  { %661 = vst.msk [vmem:[#allocation2 + $0xa] sm:$0x3] %vm135_vm1, %v658_v53  ;;  %2097 = vmatmul.mubr.msk.f32.vlgmr.msra.gmra.mrb[6].mxu0 %vm32_vm2, %v658_v53 }
0x1080   :  { %2118 = vmatprep.mubr.msk.f32.mxu0 %vm32_vm2, %v882_v54  ;;  %2271 = vmatpush3.bf16.msra.mxu0 %v2268_v30 }
0x1081   :  { %2273 = vmatprep.subr.bf16.mxu0 %v2272_v33 }
0x1084   :  { %2275 = vmatpush3.bf16.msra.mxu0 %v2272_v33 }
0x1085   :  { %2282 = vmatprep.subr.bf16.mxu0 %v2488_v3 }
0x1152   :  { %v732_v56 = vpop.f32.mrb[6].mxu0 }
0x1153   :  { %v736_v57 = vadd.f32 %v1905_v55, %v732_v56  ;;  %v2098_v58 = vpop.f32.mrb[7].mxu0 }
0x1155   :  { %2384 = vtanh.f32 %v736_v57  ;;  %v1907_v60 = vmul.f32 -1.442695, %v736_v57 }
0x1157   :  { %2386 = vpow2.f32 %v1907_v60 }
0x115f   :  { %v2385_v59 = vpop.eup %2384 }
0x1160   :  { %746 = vrot.lane.b32.xlu0 %v2385_v59, %s2491_s10 }
0x1161   :  { %v2387_v61 = vpop.eup %2386 }
0x1162   :  { %v740_v62 = vadd.f32 1.0, %v2387_v61 }
0x1164   :  { %2388 = vrcp.f32 %v740_v62 }
0x116e   :  { %v2389_v63 = vpop.eup %2388 }
0x116f   :  { %v744_v2 = vmul.f32 %v2389_v63, %v649_v49 }
0x11d2   :  { %v747_v0 = vpop.permute.xlu0 %746 }
0x11d3   :  { %v749_v1 = vmul.f32 %v2389_v63, %v747_v0 }
0x11d5   :  { %751 = vrot.lane.b32.xlu1 %v749_v1, %s2492_s11 }
0x1247   :  { %v752_v5 = vpop.permute.xlu1 %751 }
0x1248   :  { %v754_v8 = vadd.f32 %v752_v5, %v744_v2 }
0x124a   :  { %2390 = vtanh.f32 %v754_v8 }
0x1254   :  { %v2391_v9 = vpop.eup %2390 }
0x1255   :  { %757 = vrot.lane.b32.xlu0 %v2391_v9, %s2491_s10 }
0x12c7   :  { %v758_v10 = vpop.permute.xlu0 %757 }
0x12c8   :  { %v760_v11 = vmul.f32 %v2389_v63, %v758_v10 }
0x12ca   :  { %762 = vrot.lane.b32.xlu1 %v760_v11, %s2492_s11 }
0x133c   :  { %v763_v12 = vpop.permute.xlu1 %762 }
0x133d   :  { %766 = vst.msk [vmem:[#allocation2 + $0xc] sm:$0x3] %vm135_vm1, %v763_v12  ;;  %2108 = vmatmul.mubr.msk.f32.vlgmr.msra.gmra.mrb[6].mxu1 %vm32_vm2, %v763_v12 }
0x133e   :  { %2129 = vmatprep.mubr.msk.f32.mxu1 %vm2489_vm0, %v2490_v6  ;;  %2278 = vmatpush3.bf16.msra.mxu1 %v2694_v37 }
0x133f   :  { %2279 = vmatprep.subr.bf16.mxu1 %v2488_v3 }
0x1342   :  { %2281 = vmatpush3.bf16.msra.mxu1 %v2700_v41 }
0x1343   :  { %2288 = vmatprep.subr.bf16.mxu1 %v2488_v3 }
0x1345   :  { %2130 = vmatmul.mubr.f32.vlgmr.msra.gmra.mrb[8].mxu1 %v2490_v6 }
0x1346   :  { %2290 = vmatpush3.bf16.msra.mxu1 %v2694_v37  ;;  %2151 = vmatprep.mubr.msk.f32.mxu1 %vm2489_vm0, %v2490_v6 }
0x1347   :  { %2291 = vmatprep.subr.bf16.mxu1 %v2488_v3 }
0x134a   :  { %2293 = vmatpush3.bf16.msra.mxu1 %v2700_v41 }
0x134b   :  { %2300 = vmatprep.subr.bf16.mxu1 %v2488_v3 }
0x1410   :  { %v837_v14 = vpop.f32.mrb[6].mxu1 }
0x1411   :  { %v841_v15 = vadd.f32 %v1908_v13, %v837_v14  ;;  %v2109_v16 = vpop.f32.mrb[7].mxu1 }
0x1413   :  { %2392 = vtanh.f32 %v841_v15  ;;  %v1910_v18 = vmul.f32 -1.442695, %v841_v15 }
0x1415   :  { %2394 = vpow2.f32 %v1910_v18 }
0x1418   :  { %v1040_v43 = vpop.f32.mrb[8].mxu1 }
0x1419   :  { %v2131_v44 = vpop.f32.mrb[9].mxu1 }
0x141d   :  { %v2393_v17 = vpop.eup %2392 }
0x141e   :  { %851 = vrot.lane.b32.xlu0 %v2393_v17, %s2491_s10 }
0x141f   :  { %v2395_v19 = vpop.eup %2394 }
0x1420   :  { %v845_v20 = vadd.f32 1.0, %v2395_v19 }
0x1422   :  { %2396 = vrcp.f32 %v845_v20 }
0x142c   :  { %v2397_v21 = vpop.eup %2396 }
0x142d   :  { %v849_v24 = vmul.f32 %v2397_v21, %v754_v8 }
0x1490   :  { %v852_v22 = vpop.permute.xlu0 %851 }
0x1491   :  { %v854_v23 = vmul.f32 %v2397_v21, %v852_v22 }
0x1493   :  { %856 = vrot.lane.b32.xlu1 %v854_v23, %s2492_s11 }
0x1505   :  { %v857_v25 = vpop.permute.xlu1 %856 }
0x1506   :  { %v859_v26 = vadd.f32 %v857_v25, %v849_v24 }
0x1508   :  { %2398 = vtanh.f32 %v859_v26 }
0x1512   :  { %v2399_v27 = vpop.eup %2398 }
0x1513   :  { %862 = vrot.lane.b32.xlu0 %v2399_v27, %s2491_s10 }
0x1585   :  { %v863_v39 = vpop.permute.xlu0 %862 }
0x1586   :  { %v865_v40 = vmul.f32 %v2397_v21, %v863_v39 }
0x1588   :  { %867 = vrot.lane.b32.xlu1 %v865_v40, %s2492_s11 }
0x15fa   :  { %v868_v42 = vpop.permute.xlu1 %867 }
0x15fb   :  { %871 = vst.msk [vmem:[#allocation2 + $0xe] sm:$0x3] %vm135_vm1, %v868_v42  ;;  %872 = vst.msk [vmem:[#allocation4] sm:$0x3] %vm135_vm1, %v868_v42 }
0x1602   :  { %v883_v4 = vld [vmem:[#allocation2 + $0x8] sm:$0xff] }
0x1603   :  { %2119 = vmatmul.mubr.msk.f32.vlgmr.msra.gmra.mrb[8].mxu0 %vm32_vm2, %v883_v4 }
0x1604   :  { %2284 = vmatpush3.bf16.msra.mxu0 %v2694_v37  ;;  %2140 = vmatprep.mubr.msk.f32.mxu0 %vm2489_vm0, %v2490_v6 }
0x1605   :  { %2285 = vmatprep.subr.bf16.mxu0 %v2488_v3 }
0x1608   :  { %2287 = vmatpush3.bf16.msra.mxu0 %v2700_v41 }
0x1609   :  { %2294 = vmatprep.subr.bf16.mxu0 %v2488_v3 }
0x16d6   :  { %v2120_v7 = vpop.f32.mrb[8].mxu0 }
0x16d7   :  { %v968_v46 = vadd.f32 %v2120_v7, %v1911_v45  ;;  %v962_v47 = vpop.f32.mrb[9].mxu0 }
0x16d8   :  { %v963_v48 = vadd.f32 %v1911_v45, %v962_v47 }
0x16d9   :  { %972 = vst [vmem:[#allocation3 + $0x8] sm:$0xff] %v968_v46 }
0x16da   :  { %971 = vst [vmem:[#allocation3] sm:$0xff] %v963_v48 }
0x16e1   :  { %v973_v49 = vld [vmem:[#allocation3] sm:$0x3]  ;;  %v1070_v1 = vld [vmem:[#allocation3 + $0x2] sm:$0x3]  ;;  %v1172_v23 = vld [vmem:[#allocation3 + $0x4] sm:$0x3] }
0x16e2   :  { %v1044_v50 = vadd.f32 %v1040_v43, %v973_v49  ;;  %v1274_v4 = vld [vmem:[#allocation3 + $0x6] sm:$0x3] }
0x16e4   :  { %2400 = vtanh.f32 %v1044_v50  ;;  %v1914_v52 = vmul.f32 -1.442695, %v1044_v50 }
0x16e6   :  { %2402 = vpow2.f32 %v1914_v52 }
0x16ee   :  { %v2401_v51 = vpop.eup %2400 }
0x16ef   :  { %1054 = vrot.lane.b32.xlu0 %v2401_v51, %s2491_s10 }
0x16f0   :  { %v2403_v53 = vpop.eup %2402 }
0x16f1   :  { %v1048_v54 = vadd.f32 1.0, %v2403_v53 }
0x16f3   :  { %2404 = vrcp.f32 %v1048_v54 }
0x16fd   :  { %v2405_v55 = vpop.eup %2404 }
0x16fe   :  { %v1052_v58 = vmul.f32 0.0, %v2405_v55 }
0x1761   :  { %v1055_v56 = vpop.permute.xlu0 %1054 }
0x1762   :  { %v1057_v57 = vmul.f32 %v2405_v55, %v1055_v56 }
0x1764   :  { %1059 = vrot.lane.b32.xlu1 %v1057_v57, %s2492_s11 }
0x17d6   :  { %v1060_v59 = vpop.permute.xlu1 %1059 }
0x17d7   :  { %v1062_v60 = vadd.f32 %v1060_v59, %v1052_v58  ;;  %v1376_v59 = vld [vmem:[#allocation3 + $0x8] sm:$0x3] }
0x17d9   :  { %2406 = vtanh.f32 %v1062_v60 }
0x17e3   :  { %v2407_v61 = vpop.eup %2406 }
0x17e4   :  { %1065 = vrot.lane.b32.xlu0 %v2407_v61, %s2491_s10 }
0x1856   :  { %v1066_v62 = vpop.permute.xlu0 %1065 }
0x1857   :  { %v1068_v63 = vmul.f32 %v2405_v55, %v1066_v62 }
0x1859   :  { %1072 = vrot.lane.b32.xlu1 %v1068_v63, %s2492_s11 }
0x18cb   :  { %v1073_v0 = vpop.permute.xlu1 %1072 }
0x18cc   :  { %2141 = vmatmul.mubr.msk.f32.vlgmr.msra.gmra.mrb[10].mxu0 %vm32_vm2, %v1073_v0 }
0x18cd   :  { %2296 = vmatpush3.bf16.msra.mxu0 %v2694_v37  ;;  %2162 = vmatprep.mubr.msk.f32.mxu0 %vm2489_vm0, %v2490_v6 }
0x18ce   :  { %2297 = vmatprep.subr.bf16.mxu0 %v2488_v3 }
0x18d1   :  { %2299 = vmatpush3.bf16.msra.mxu0 %v2700_v41 }
0x18d2   :  { %2306 = vmatprep.subr.bf16.mxu0 %v2488_v3 }
0x199f   :  { %v1142_v2 = vpop.f32.mrb[10].mxu0 }
0x19a0   :  { %v1146_v5 = vadd.f32 %v1142_v2, %v1070_v1  ;;  %v2142_v8 = vpop.f32.mrb[11].mxu0 }
0x19a2   :  { %2408 = vtanh.f32 %v1146_v5  ;;  %v1916_v10 = vmul.f32 -1.442695, %v1146_v5 }
0x19a4   :  { %2410 = vpow2.f32 %v1916_v10 }
0x19ac   :  { %v2409_v9 = vpop.eup %2408 }
0x19ad   :  { %1156 = vrot.lane.b32.xlu0 %v2409_v9, %s2491_s10 }
0x19ae   :  { %v2411_v11 = vpop.eup %2410 }
0x19af   :  { %v1150_v12 = vadd.f32 1.0, %v2411_v11 }
0x19b1   :  { %2412 = vrcp.f32 %v1150_v12 }
0x19bb   :  { %v2413_v13 = vpop.eup %2412 }
0x19bc   :  { %v1154_v16 = vmul.f32 %v2413_v13, %v1062_v60 }
0x1a1f   :  { %v1157_v14 = vpop.permute.xlu0 %1156 }
0x1a20   :  { %v1159_v15 = vmul.f32 %v2413_v13, %v1157_v14 }
0x1a22   :  { %1161 = vrot.lane.b32.xlu1 %v1159_v15, %s2492_s11 }
0x1a94   :  { %v1162_v17 = vpop.permute.xlu1 %1161 }
0x1a95   :  { %v1164_v18 = vadd.f32 %v1162_v17, %v1154_v16  ;;  %v1478_v17 = vld [vmem:[#allocation3 + $0xa] sm:$0x3] }
0x1a97   :  { %2414 = vtanh.f32 %v1164_v18 }
0x1aa1   :  { %v2415_v19 = vpop.eup %2414 }
0x1aa2   :  { %1167 = vrot.lane.b32.xlu0 %v2415_v19, %s2491_s10 }
0x1b14   :  { %v1168_v20 = vpop.permute.xlu0 %1167 }
0x1b15   :  { %v1170_v21 = vmul.f32 %v2413_v13, %v1168_v20 }
0x1b17   :  { %1174 = vrot.lane.b32.xlu1 %v1170_v21, %s2492_s11 }
0x1b89   :  { %v1175_v22 = vpop.permute.xlu1 %1174 }
0x1b8a   :  { %2152 = vmatmul.mubr.msk.f32.vlgmr.msra.gmra.mrb[10].mxu1 %vm32_vm2, %v1175_v22 }
0x1b8b   :  { %2302 = vmatpush3.bf16.msra.mxu1 %v2694_v37  ;;  %2173 = vmatprep.mubr.msk.f32.mxu1 %vm2489_vm0, %v2490_v6 }
0x1b8c   :  { %2303 = vmatprep.subr.bf16.mxu1 %v2488_v3 }
0x1b8f   :  { %2305 = vmatpush3.bf16.msra.mxu1 %v2700_v41 }
0x1b90   :  { %2312 = vmatprep.subr.bf16.mxu1 %v2488_v3 }
0x1c5d   :  { %v1244_v24 = vpop.f32.mrb[10].mxu1 }
0x1c5e   :  { %v1248_v25 = vadd.f32 %v1244_v24, %v1172_v23  ;;  %v2153_v26 = vpop.f32.mrb[11].mxu1 }
0x1c60   :  { %2416 = vtanh.f32 %v1248_v25  ;;  %v1918_v28 = vmul.f32 -1.442695, %v1248_v25 }
0x1c62   :  { %2418 = vpow2.f32 %v1918_v28 }
0x1c6a   :  { %v2417_v27 = vpop.eup %2416 }
0x1c6b   :  { %1258 = vrot.lane.b32.xlu0 %v2417_v27, %s2491_s10 }
0x1c6c   :  { %v2419_v29 = vpop.eup %2418 }
0x1c6d   :  { %v1252_v30 = vadd.f32 1.0, %v2419_v29 }
0x1c6f   :  { %2420 = vrcp.f32 %v1252_v30 }
0x1c79   :  { %v2421_v31 = vpop.eup %2420 }
0x1c7a   :  { %v1256_v34 = vmul.f32 %v2421_v31, %v1164_v18 }
0x1cdd   :  { %v1259_v32 = vpop.permute.xlu0 %1258 }
0x1cde   :  { %v1261_v33 = vmul.f32 %v2421_v31, %v1259_v32 }
0x1ce0   :  { %1263 = vrot.lane.b32.xlu1 %v1261_v33, %s2492_s11  ;;  %v1580_v33 = vld [vmem:[#allocation3 + $0xc] sm:$0x3] }
0x1d52   :  { %v1264_v35 = vpop.permute.xlu1 %1263 }
0x1d53   :  { %v1266_v36 = vadd.f32 %v1264_v35, %v1256_v34 }
0x1d55   :  { %2422 = vtanh.f32 %v1266_v36 }
0x1d5f   :  { %v2423_v38 = vpop.eup %2422 }
0x1d60   :  { %1269 = vrot.lane.b32.xlu0 %v2423_v38, %s2491_s10 }
0x1dd2   :  { %v1270_v39 = vpop.permute.xlu0 %1269 }
0x1dd3   :  { %v1272_v40 = vmul.f32 %v2421_v31, %v1270_v39 }
0x1dd5   :  { %1276 = vrot.lane.b32.xlu1 %v1272_v40, %s2492_s11 }
0x1e47   :  { %v1277_v42 = vpop.permute.xlu1 %1276 }
0x1e48   :  { %2163 = vmatmul.mubr.msk.f32.vlgmr.msra.gmra.mrb[12].mxu0 %vm32_vm2, %v1277_v42 }
0x1e49   :  { %2308 = vmatpush3.bf16.msra.mxu0 %v2694_v37  ;;  %2184 = vmatprep.mubr.msk.f32.mxu0 %vm2489_vm0, %v2490_v6 }
0x1e4a   :  { %2309 = vmatprep.subr.bf16.mxu0 %v2488_v3 }
0x1e4d   :  { %2311 = vmatpush3.bf16.msra.mxu0 %v2700_v41 }
0x1e4e   :  { %2318 = vmatprep.subr.bf16.mxu0 %v2488_v3 }
0x1f1b   :  { %v1346_v43 = vpop.f32.mrb[12].mxu0 }
0x1f1c   :  { %v1350_v44 = vadd.f32 %v1346_v43, %v1274_v4  ;;  %v2164_v45 = vpop.f32.mrb[13].mxu0 }
0x1f1e   :  { %2424 = vtanh.f32 %v1350_v44  ;;  %v1920_v46 = vmul.f32 -1.442695, %v1350_v44 }
0x1f20   :  { %2426 = vpow2.f32 %v1920_v46 }
0x1f28   :  { %v2425_v7 = vpop.eup %2424 }
0x1f29   :  { %1360 = vrot.lane.b32.xlu0 %v2425_v7, %s2491_s10 }
0x1f2a   :  { %v2427_v47 = vpop.eup %2426 }
0x1f2b   :  { %v1354_v48 = vadd.f32 1.0, %v2427_v47 }
0x1f2d   :  { %2428 = vrcp.f32 %v1354_v48 }
0x1f37   :  { %v2429_v49 = vpop.eup %2428 }
0x1f38   :  { %v1358_v52 = vmul.f32 %v2429_v49, %v1266_v36 }
0x1f9b   :  { %v1361_v50 = vpop.permute.xlu0 %1360 }
0x1f9c   :  { %v1363_v51 = vmul.f32 %v2429_v49, %v1361_v50  ;;  %v1682_v50 = vld [vmem:[#allocation3 + $0xe] sm:$0x3] }
0x1f9e   :  { %1365 = vrot.lane.b32.xlu1 %v1363_v51, %s2492_s11 }
0x2010   :  { %v1366_v53 = vpop.permute.xlu1 %1365 }
0x2011   :  { %v1368_v54 = vadd.f32 %v1366_v53, %v1358_v52 }
0x2013   :  { %2430 = vtanh.f32 %v1368_v54 }
0x201d   :  { %v2431_v55 = vpop.eup %2430 }
0x201e   :  { %1371 = vrot.lane.b32.xlu0 %v2431_v55, %s2491_s10 }
0x2090   :  { %v1372_v56 = vpop.permute.xlu0 %1371 }
0x2091   :  { %v1374_v57 = vmul.f32 %v2429_v49, %v1372_v56 }
0x2093   :  { %1378 = vrot.lane.b32.xlu1 %v1374_v57, %s2492_s11 }
0x2105   :  { %v1379_v58 = vpop.permute.xlu1 %1378 }
0x2106   :  { %2174 = vmatmul.mubr.msk.f32.vlgmr.msra.gmra.mrb[12].mxu1 %vm32_vm2, %v1379_v58 }
0x2107   :  { %2314 = vmatpush3.bf16.msra.mxu1 %v2694_v37  ;;  %2195 = vmatprep.mubr.msk.f32.mxu1 %vm2489_vm0, %v2490_v6 }
0x2108   :  { %2315 = vmatprep.subr.bf16.mxu1 %v2488_v3 }
0x210b   :  { %2317 = vmatpush3.bf16.msra.mxu1 %v2700_v41 }
0x210c   :  { %2324 = vmatprep.subr.bf16.mxu1 %v2488_v3 }
0x21d9   :  { %v1448_v60 = vpop.f32.mrb[12].mxu1 }
0x21da   :  { %v1452_v61 = vadd.f32 %v1448_v60, %v1376_v59  ;;  %v2175_v62 = vpop.f32.mrb[13].mxu1 }
0x21dc   :  { %2432 = vtanh.f32 %v1452_v61  ;;  %v1922_v0 = vmul.f32 -1.442695, %v1452_v61 }
0x21de   :  { %2434 = vpow2.f32 %v1922_v0 }
0x21e6   :  { %v2433_v63 = vpop.eup %2432 }
0x21e7   :  { %1462 = vrot.lane.b32.xlu0 %v2433_v63, %s2491_s10 }
0x21e8   :  { %v2435_v1 = vpop.eup %2434 }
0x21e9   :  { %v1456_v2 = vadd.f32 1.0, %v2435_v1  ;;  %v1789_v1 = vld [vmem:[%s2830_s5] sm:$0xff] }
0x21eb   :  { %2436 = vrcp.f32 %v1456_v2  ;;  %v1790_v2 = vld [vmem:[%s2830_s5 + $0x8] sm:$0xff] }
0x21f5   :  { %v2437_v5 = vpop.eup %2436 }
0x21f6   :  { %v1460_v10 = vmul.f32 %v2437_v5, %v1368_v54 }
0x2259   :  { %v1463_v8 = vpop.permute.xlu0 %1462 }
0x225a   :  { %v1465_v9 = vmul.f32 %v2437_v5, %v1463_v8  ;;  %v2325_v8 = vpack.c.bf16 %v1790_v2, %v1789_v1 }
0x225c   :  { %1467 = vrot.lane.b32.xlu1 %v1465_v9, %s2492_s11  ;;  %v1792_v9 = vld [vmem:[%s2830_s5 + $0x18] sm:$0xff] }
0x22ce   :  { %v1468_v11 = vpop.permute.xlu1 %1467 }
0x22cf   :  { %v1470_v12 = vadd.f32 %v1468_v11, %v1460_v10 }
0x22d1   :  { %2438 = vtanh.f32 %v1470_v12 }
0x22db   :  { %v2439_v13 = vpop.eup %2438 }
0x22dc   :  { %1473 = vrot.lane.b32.xlu0 %v2439_v13, %s2491_s10 }
0x234e   :  { %v1474_v14 = vpop.permute.xlu0 %1473 }
0x234f   :  { %v1476_v15 = vmul.f32 %v2437_v5, %v1474_v14  ;;  %v1791_v5 = vld [vmem:[%s2830_s5 + $0x10] sm:$0xff]  ;;  %s2493_s5 = smov [#allocation5]  }
0x2350   :  { %v2328_v10 = vpack.c.bf16 %v1792_v9, %v1791_v5  ;;  %s1881_s26 = sshll.u32 %s2493_s5, 4  ;;  %s1882_s26 = int_to_ptr.vmem [resolvable:$true] %s1881_s26 }
0x2351   :  { %1480 = vrot.lane.b32.xlu1 %v1476_v15, %s2492_s11  ;;  %v1929_v15 = vld [vmem:[%s2831_s6] ss:$0 sm:$0xff]  ;;  %s2464_s27 = scalar_lea.vmem %s1882_s26, 64  ;;  %p2469_p1 = scmp.lt.s32.totalorder %s1882_s26, %s1882_s26 }
0x2352   :  { %p2465_p0 = scmp.ne.s32.totalorder %s1882_s26, %s2464_s27  ;;  %p2470_p2 = scmp.lt.s32.totalorder %s2464_s27, %s2464_s27 }
0x2354   :  { %p2471_p3 = por %p2470_p2, %p2469_p1 }
0x2356   :  { %p2472_p4 = pnand %p2471_p3, %p2465_p0 }
0x23c3   :  { %v1481_v16 = vpop.permute.xlu1 %1480 }
0x23c4   :  { %2185 = vmatmul.mubr.msk.f32.vlgmr.msra.gmra.mrb[14].mxu0 %vm32_vm2, %v1481_v16 }
0x23c5   :  { %2320 = vmatpush3.bf16.msra.mxu0 %v2694_v37  ;;  %2206 = vmatprep.mubr.msk.f32.mxu0 %vm2489_vm0, %v2490_v6 }
0x23c6   :  { %2321 = vmatprep.subr.bf16.mxu0 %v2488_v3 }
0x23c9   :  { %2323 = vmatpush3.bf16.msra.mxu0 %v2700_v41 }
0x2497   :  { %v1550_v18 = vpop.f32.mrb[14].mxu0 }
0x2498   :  { %v1554_v19 = vadd.f32 %v1550_v18, %v1478_v17  ;;  %v2186_v20 = vpop.f32.mrb[15].mxu0 }
0x249a   :  { %2440 = vtanh.f32 %v1554_v19  ;;  %v1924_v22 = vmul.f32 -1.442695, %v1554_v19 }
0x249c   :  { %2442 = vpow2.f32 %v1924_v22 }
0x24a4   :  { %v2441_v21 = vpop.eup %2440 }
0x24a5   :  { %1564 = vrot.lane.b32.xlu0 %v2441_v21, %s2491_s10 }
0x24a6   :  { %v2443_v23 = vpop.eup %2442 }
0x24a7   :  { %v1558_v24 = vadd.f32 1.0, %v2443_v23 }
0x24a9   :  { %2444 = vrcp.f32 %v1558_v24 }
0x24b3   :  { %v2445_v37 = vpop.eup %2444 }
0x24b4   :  { %v1562_v27 = vmul.f32 %v2445_v37, %v1470_v12 }
0x2517   :  { %v1565_v25 = vpop.permute.xlu0 %1564 }
0x2518   :  { %v1567_v26 = vmul.f32 %v2445_v37, %v1565_v25 }
0x251a   :  { %1569 = vrot.lane.b32.xlu1 %v1567_v26, %s2492_s11 }
0x258c   :  { %v1570_v41 = vpop.permute.xlu1 %1569 }
0x258d   :  { %v1572_v28 = vadd.f32 %v1570_v41, %v1562_v27 }
0x258f   :  { %2446 = vtanh.f32 %v1572_v28 }
0x2599   :  { %v2447_v29 = vpop.eup %2446 }
0x259a   :  { %1575 = vrot.lane.b32.xlu0 %v2447_v29, %s2491_s10 }
0x260c   :  { %v1576_v30 = vpop.permute.xlu0 %1575 }
0x260d   :  { %v1578_v31 = vmul.f32 %v2445_v37, %v1576_v30 }
0x260f   :  { %1582 = vrot.lane.b32.xlu1 %v1578_v31, %s2492_s11 }
0x2681   :  { %v1583_v32 = vpop.permute.xlu1 %1582 }
0x2682   :  { %2196 = vmatmul.mubr.msk.f32.vlgmr.msra.gmra.mrb[14].mxu1 %vm32_vm2, %v1583_v32 }
0x2683   :  { %2217 = vmatprep.mubr.msk.f32.mxu1 %vm2489_vm0, %v2490_v6  ;;  %2326 = vmatpush3.bf16.msra.mxu1 %v2325_v8 }
0x2684   :  { %2327 = vmatprep.subr.bf16.mxu1 %v2488_v3 }
0x2687   :  { %2329 = vmatpush3.bf16.msra.mxu1 %v2328_v10 }
0x2755   :  { %v1652_v34 = vpop.f32.mrb[14].mxu1 }
0x2756   :  { %v1656_v35 = vadd.f32 %v1652_v34, %v1580_v33  ;;  %v2197_v36 = vpop.f32.mrb[15].mxu1 }
0x2758   :  { %2448 = vtanh.f32 %v1656_v35  ;;  %v1926_v39 = vmul.f32 -1.442695, %v1656_v35 }
0x275a   :  { %2450 = vpow2.f32 %v1926_v39 }
0x2762   :  { %v2449_v38 = vpop.eup %2448 }
0x2763   :  { %1666 = vrot.lane.b32.xlu0 %v2449_v38, %s2491_s10 }
0x2764   :  { %v2451_v40 = vpop.eup %2450 }
0x2765   :  { %v1660_v42 = vadd.f32 1.0, %v2451_v40 }
0x2767   :  { %2452 = vrcp.f32 %v1660_v42 }
0x2771   :  { %v2453_v4 = vpop.eup %2452 }
0x2772   :  { %v1664_v45 = vmul.f32 %v2453_v4, %v1572_v28 }
0x27d5   :  { %v1667_v43 = vpop.permute.xlu0 %1666 }
0x27d6   :  { %v1669_v44 = vmul.f32 %v2453_v4, %v1667_v43 }
0x27d8   :  { %1671 = vrot.lane.b32.xlu1 %v1669_v44, %s2492_s11 }
0x284a   :  { %v1672_v6 = vpop.permute.xlu1 %1671 }
0x284b   :  { %v1674_v7 = vadd.f32 %v1672_v6, %v1664_v45 }
0x284d   :  { %2454 = vtanh.f32 %v1674_v7 }
0x2857   :  { %v2455_v46 = vpop.eup %2454 }
0x2858   :  { %1677 = vrot.lane.b32.xlu0 %v2455_v46, %s2491_s10 }
0x28ca   :  { %v1678_v47 = vpop.permute.xlu0 %1677 }
0x28cb   :  { %v1680_v48 = vmul.f32 %v2453_v4, %v1678_v47 }
0x28cd   :  { %1684 = vrot.lane.b32.xlu1 %v1680_v48, %s2492_s11 }
0x293f   :  { %v1685_v49 = vpop.permute.xlu1 %1684 }
0x2940   :  { %2207 = vmatmul.mubr.msk.f32.vlgmr.msra.gmra.mrb[16].mxu0 %vm32_vm2, %v1685_v49 }
0x2a13   :  { %v1754_v51 = vpop.f32.mrb[16].mxu0 }
0x2a14   :  { %v1758_v52 = vadd.f32 %v1754_v51, %v1682_v50  ;;  %v2208_v53 = vpop.f32.mrb[17].mxu0 }
0x2a16   :  { %2456 = vtanh.f32 %v1758_v52  ;;  %v1928_v55 = vmul.f32 -1.442695, %v1758_v52 }
0x2a18   :  { %2458 = vpow2.f32 %v1928_v55 }
0x2a20   :  { %v2457_v54 = vpop.eup %2456 }
0x2a21   :  { %1768 = vrot.lane.b32.xlu0 %v2457_v54, %s2491_s10 }
0x2a22   :  { %v2459_v56 = vpop.eup %2458 }
0x2a23   :  { %v1762_v57 = vadd.f32 1.0, %v2459_v56 }
0x2a25   :  { %2460 = vrcp.f32 %v1762_v57 }
0x2a2f   :  { %v2461_v58 = vpop.eup %2460 }
0x2a30   :  { %v1766_v61 = vmul.f32 %v2461_v58, %v1674_v7 }
0x2a93   :  { %v1769_v59 = vpop.permute.xlu0 %1768 }
0x2a94   :  { %v1771_v60 = vmul.f32 %v2461_v58, %v1769_v59 }
0x2a96   :  { %1773 = vrot.lane.b32.xlu1 %v1771_v60, %s2492_s11 }
0x2b08   :  { %v1774_v62 = vpop.permute.xlu1 %1773 }
0x2b09   :  { %v1776_v63 = vadd.f32 %v1774_v62, %v1766_v61 }
0x2b0b   :  { %2462 = vtanh.f32 %v1776_v63 }
0x2b15   :  { %v2463_v0 = vpop.eup %2462 }
0x2b16   :  { %1779 = vrot.lane.b32.xlu0 %v2463_v0, %s2491_s10 }
0x2b88   :  { %v1780_v11 = vpop.permute.xlu0 %1779 }
0x2b89   :  { %v1782_v12 = vmul.f32 %v2461_v58, %v1780_v11 }
0x2b8b   :  { %1784 = vrot.lane.b32.xlu1 %v1782_v12, %s2492_s11 }
0x2bfd   :  { %v1785_v13 = vpop.permute.xlu1 %1784 }
0x2bfe   :  { %1787 = vst.msk [vmem:[#allocation4 + $0x2] sm:$0x3] %vm135_vm1, %v1785_v13 }
0x2c05   :  { %v1788_v14 = vld [vmem:[#allocation4] sm:$0xf] }
0x2c06   :  { %2218 = vmatmul.mubr.msk.f32.vlgmr.msra.gmra.mrb[16].mxu1 %vm32_vm2, %v1788_v14 }
0x2cd9   :  { %v1869_v16 = vpop.f32.mrb[16].mxu1 }
0x2cda   :  { %v1870_v3 = vadd.f32 %v1929_v15, %v1869_v16  ;;  %v2219_v17 = vpop.f32.mrb[17].mxu1 }
0x2cdc   :  { %1874 = vst.msk [vmem:[#allocation5] sm:$0xf] %vm1873_vm3, %v1870_v3 }
0x2cdd   :  { %2475 = shalt.err (!%p2472_p4)
}
0x2cde   :  { %s2476_s29 = scalar_lea.hbm %s2832_s7, 64 }
0x2cdf   :  { %p2477_p5 = scmp.ne.s32.totalorder %s2832_s7, %s2476_s29  ;;  %p2480_p6 = scmp.lt.u32.totalorder %s2476_s29, %s2832_s7 }
0x2ce1   :  { %p2482_p7 = pnand %p2480_p6, %p2477_p5 }
0x2ce3   :  { %2485 = shalt.err (!%p2482_p7)
}
0x2ce4   :  { %1884 = dma.vmem_to_hbm [thread:$0]  %s1882_s26, 64, %s2832_s7, [#allocation6]  }
0x2ce5   :  { %2486 = dma.done.wait [#allocation6], 64  }
0x2ce6   :  { %2487 = vsyncadd [#allocation6], 4294967232 }
0x2ce7   :  { %1888 = vsyncpa [#allocation6], 1 }

</bundles_post_ra>
